<compile_context>
chip_gen: v6e
topology: v6e:2x2x1
jax: 0.10.0
libtpu: 0.0.40
codegen_flags: <defaults>
</compile_context>

<pallas_src>
import functools
import math

import jax
import jax.numpy as jnp
from jax.experimental import pallas as pl
from jax.experimental.pallas import tpu as pltpu


# ----------------------------------------------------------------------------
# Helpers
# ----------------------------------------------------------------------------
@functools.lru_cache(maxsize=None)
def _vmem_limit_bytes():
    """~3/4 of physical VMEM, clamped to [32 MiB, 96 MiB]; safe per generation."""
    try:
        cap = int(pltpu.get_tpu_info().vmem_capacity_bytes)
    except Exception:
        cap = 64 * 1024 * 1024  # conservative fallback (v7x physical size)
    return max(32 * 1024 * 1024, min((cap * 3) // 4, 96 * 1024 * 1024))


def _mosaic_params(sem):
    return pltpu.CompilerParams(dimension_semantics=sem,
                                vmem_limit_bytes=_vmem_limit_bytes())


def _pick_tile(dim, pref, align):
    """Largest tile <= pref that evenly divides dim, stepping by `align`."""
    if dim <= pref:
        return dim
    t = (pref // align) * align
    while t >= align:
        if dim % t == 0:
            return t
        t -= align
    return dim  # full dim is always a legal block


# ----------------------------------------------------------------------------
# Tiled matmul + bias (fused QKV projection).  bf16 in/out, f32 accumulator.
# ----------------------------------------------------------------------------
def _linear_kernel(x_ref, w_ref, b_ref, o_ref, acc_ref):
    k = pl.program_id(2)

    @pl.when(k == 0)
    def _():
        acc_ref[...] = jnp.zeros_like(acc_ref)

    acc_ref[...] += jnp.dot(x_ref[...], w_ref[...],
                            preferred_element_type=jnp.float32)

    @pl.when(k == pl.num_programs(2) - 1)
    def _():
        o_ref[...] = (acc_ref[...] + b_ref[...]).astype(o_ref.dtype)


def linear(x, w, b, tm=512, tn=1024, tk=1536):
    M, K = x.shape
    N = w.shape[1]
    tm = _pick_tile(M, tm, 8)
    tn = _pick_tile(N, tn, 128)
    tk = _pick_tile(K, tk, 128)
    assert M % tm == 0 and N % tn == 0 and K % tk == 0
    grid = (M // tm, N // tn, K // tk)
    return pl.pallas_call(
        _linear_kernel,
        grid=grid,
        in_specs=[pl.BlockSpec((tm, tk), lambda i, j, k: (i, k)),
                  pl.BlockSpec((tk, tn), lambda i, j, k: (k, j)),
                  pl.BlockSpec((1, tn), lambda i, j, k: (0, j))],
        out_specs=pl.BlockSpec((tm, tn), lambda i, j, k: (i, j)),
        out_shape=jax.ShapeDtypeStruct((M, N), jnp.bfloat16),
        scratch_shapes=[pltpu.VMEM((tm, tn), jnp.float32)],
        compiler_params=_mosaic_params(("parallel", "parallel", "arbitrary")),
    )(x, w, b.reshape(1, N))


# ----------------------------------------------------------------------------
# Fused: matmul (full-K-resident weight) + bias + residual + LayerNorm
# ----------------------------------------------------------------------------
def _linear_res_ln_kernel(x_ref, w_ref, b_ref, r_ref, g_ref, be_ref, o_ref, *, eps):
    y = jnp.dot(x_ref[...], w_ref[...], preferred_element_type=jnp.float32)
    y = y + b_ref[...] + r_ref[...].astype(jnp.float32)
    mean = jnp.mean(y, axis=-1, keepdims=True)
    yc = y - mean
    var = jnp.mean(yc * yc, axis=-1, keepdims=True)
    inv = jax.lax.rsqrt(var + eps)
    o_ref[...] = (yc * inv * g_ref[...] + be_ref[...]).astype(o_ref.dtype)


def linear_res_ln(x, w, b, residual, gamma, beta, tm=512):
    M, K = x.shape
    N = w.shape[1]
    tm = _pick_tile(M, tm, 8)
    return pl.pallas_call(
        functools.partial(_linear_res_ln_kernel, eps=1e-12),
        grid=(M // tm,),
        in_specs=[pl.BlockSpec((tm, K), lambda i: (i, 0)),
                  pl.BlockSpec((K, N), lambda i: (0, 0)),
                  pl.BlockSpec((1, N), lambda i: (0, 0)),
                  pl.BlockSpec((tm, N), lambda i: (i, 0)),
                  pl.BlockSpec((1, N), lambda i: (0, 0)),
                  pl.BlockSpec((1, N), lambda i: (0, 0))],
        out_specs=pl.BlockSpec((tm, N), lambda i: (i, 0)),
        out_shape=jax.ShapeDtypeStruct((M, N), jnp.bfloat16),
        compiler_params=_mosaic_params(("parallel",)),
    )(x, w, b.reshape(1, N), residual, gamma.reshape(1, N), beta.reshape(1, N))


# ----------------------------------------------------------------------------
# Fully fused FFN: up-proj + GELU + down-proj + residual + LayerNorm.
# The (tm, inter) intermediate never leaves VMEM; residual == x (read once).
# ----------------------------------------------------------------------------
def _ffn_kernel(x_ref, wi_ref, bi_ref, wo_ref, bo_ref, g_ref, be_ref, o_ref, *, eps):
    x = x_ref[...]                                                   # (tm, H) bf16
    h = jnp.dot(x, wi_ref[...], preferred_element_type=jnp.float32) + bi_ref[...]
    h = 0.5 * h * (1.0 + jax.lax.erf(h * 0.7071067811865476))       # exact GELU
    y = jnp.dot(h.astype(jnp.bfloat16), wo_ref[...],
                preferred_element_type=jnp.float32) + bo_ref[...]
    y = y + x.astype(jnp.float32)                                    # residual
    mean = jnp.mean(y, axis=-1, keepdims=True)
    yc = y - mean
    var = jnp.mean(yc * yc, axis=-1, keepdims=True)
    inv = jax.lax.rsqrt(var + eps)
    o_ref[...] = (yc * inv * g_ref[...] + be_ref[...]).astype(o_ref.dtype)


def ffn_res_ln(x, wi, bi, wo, bo, gamma, beta, tm=256):
    M, H = x.shape
    inter = wi.shape[1]
    tm = _pick_tile(M, tm, 8)
    return pl.pallas_call(
        functools.partial(_ffn_kernel, eps=1e-12),
        grid=(M // tm,),
        in_specs=[pl.BlockSpec((tm, H), lambda i: (i, 0)),
                  pl.BlockSpec((H, inter), lambda i: (0, 0)),
                  pl.BlockSpec((1, inter), lambda i: (0, 0)),
                  pl.BlockSpec((inter, H), lambda i: (0, 0)),
                  pl.BlockSpec((1, H), lambda i: (0, 0)),
                  pl.BlockSpec((1, H), lambda i: (0, 0)),
                  pl.BlockSpec((1, H), lambda i: (0, 0))],
        out_specs=pl.BlockSpec((tm, H), lambda i: (i, 0)),
        out_shape=jax.ShapeDtypeStruct((M, H), jnp.bfloat16),
        compiler_params=_mosaic_params(("parallel",)),
    )(x, wi, bi.reshape(1, inter), wo, bo.reshape(1, H),
      gamma.reshape(1, H), beta.reshape(1, H))


# ----------------------------------------------------------------------------
# LayerNorm (no residual) for the embedding output.  f32 in, bf16 out.
# ----------------------------------------------------------------------------
def _layernorm_kernel(x_ref, g_ref, b_ref, o_ref, *, eps):
    x = x_ref[...].astype(jnp.float32)
    mean = jnp.mean(x, axis=-1, keepdims=True)
    xc = x - mean
    var = jnp.mean(xc * xc, axis=-1, keepdims=True)
    inv = jax.lax.rsqrt(var + eps)
    o_ref[...] = (xc * inv * g_ref[...] + b_ref[...]).astype(o_ref.dtype)


def layer_norm(x, gamma, beta, tm=512):
    M, H = x.shape
    tm = _pick_tile(M, tm, 8)
    return pl.pallas_call(
        functools.partial(_layernorm_kernel, eps=1e-12),
        grid=(M // tm,),
        in_specs=[pl.BlockSpec((tm, H), lambda i: (i, 0)),
                  pl.BlockSpec((1, H), lambda i: (0, 0)),
                  pl.BlockSpec((1, H), lambda i: (0, 0))],
        out_specs=pl.BlockSpec((tm, H), lambda i: (i, 0)),
        out_shape=jax.ShapeDtypeStruct((M, H), jnp.bfloat16),
        compiler_params=_mosaic_params(("parallel",)),
    )(x, gamma.reshape(1, H), beta.reshape(1, H))


# ----------------------------------------------------------------------------
# Attention: grid over batch; BlockSpecs index directly into the (M, 3H) fused
# QKV matrix and write the concat-heads (M, H) layout (lane-dense stores).
# ----------------------------------------------------------------------------
def _attention_kernel(qkv_ref, m_ref, o_ref, *, heads, dh, scale):
    H = heads * dh
    mask = m_ref[...]                                   # (1, S) f32, broadcast over queries
    qkv = qkv_ref[...]                                  # (S, 3H) bf16, one batch element
    for h in range(heads):                              # static unroll, heads is small
        q = qkv[:, h * dh:(h + 1) * dh]
        k = qkv[:, H + h * dh:H + (h + 1) * dh]
        v = qkv[:, 2 * H + h * dh:2 * H + (h + 1) * dh]
        # q @ k^T without an explicit transpose: contract last dims of both.
        s = jax.lax.dot_general(q, k, (((1,), (1,)), ((), ())),
                                preferred_element_type=jnp.float32)  # (S, S) f32
        s = s * scale + mask
        s = s - jnp.max(s, axis=-1, keepdims=True)
        p = jnp.exp(s)
        inv = pl.reciprocal(jnp.sum(p, axis=-1, keepdims=True), approx=True)
        ctx = jnp.dot((p * inv).astype(jnp.bfloat16), v,
                      preferred_element_type=jnp.float32)            # (S, dh)
        o_ref[:, h * dh:(h + 1) * dh] = ctx.astype(o_ref.dtype)


def attention(qkv, add_mask, *, batch, seq, heads, dh, scale):
    # TODO(synk): for very long S, additionally block the key axis with an
    # online (flash-style) softmax; for BERT-scale S the (S, S) tile fits VMEM.
    M, three_h = qkv.shape
    H = heads * dh
    return pl.pallas_call(
        functools.partial(_attention_kernel, heads=heads, dh=dh, scale=scale),
        grid=(batch,),
        in_specs=[pl.BlockSpec((seq, three_h), lambda b: (b, 0)),
                  pl.BlockSpec((None, 1, seq), lambda b: (b, 0, 0))],
        out_specs=pl.BlockSpec((seq, H), lambda b: (b, 0)),
        out_shape=jax.ShapeDtypeStruct((M, H), jnp.bfloat16),
        compiler_params=_mosaic_params(("parallel",)),
    )(qkv, add_mask)


# ----------------------------------------------------------------------------
# Fused pooler (tanh) + regressor + classifier heads (lane-dense padded output)
# ----------------------------------------------------------------------------
def _pooler_heads_kernel(cls_ref, pw_ref, pb_ref, hw_ref, hb_ref, o_ref):
    pooled = jnp.tanh(jnp.dot(cls_ref[...], pw_ref[...],
                              preferred_element_type=jnp.float32) + pb_ref[...])
    o_ref[...] = jnp.dot(pooled.astype(jnp.bfloat16), hw_ref[...],
                         preferred_element_type=jnp.float32) + hb_ref[...]


def pooler_heads(cls_tok, pool_w, pool_b, head_w, head_b):
    B, H = cls_tok.shape
    P = head_w.shape[1]
    return pl.pallas_call(
        _pooler_heads_kernel,
        grid=(1,),
        in_specs=[pl.BlockSpec((B, H), lambda i: (0, 0)),
                  pl.BlockSpec((H, H), lambda i: (0, 0)),
                  pl.BlockSpec((1, H), lambda i: (0, 0)),
                  pl.BlockSpec((H, P), lambda i: (0, 0)),
                  pl.BlockSpec((1, P), lambda i: (0, 0))],
        out_specs=pl.BlockSpec((B, P), lambda i: (0, 0)),
        out_shape=jax.ShapeDtypeStruct((B, P), jnp.float32),
        compiler_params=_mosaic_params(("arbitrary",)),
    )(cls_tok, pool_w, pool_b.reshape(1, H), head_w, head_b.reshape(1, P))


# ----------------------------------------------------------------------------
# Deterministic parameter construction (synthetic, BERT-style shapes)
# ----------------------------------------------------------------------------
HEAD_PAD = 128   # lane-dense padded width for the fused regressor/classifier


def init_params(key, *, vocab, hidden, layers, heads, inter, max_pos, type_vocab):
    del heads
    keys = iter(jax.random.split(key, 16 + 16 * layers))

    def dense(shape, dtype=jnp.bfloat16):
        return (0.02 * jax.random.normal(next(keys), shape, jnp.float32)).astype(dtype)

    ones = lambda n: jnp.ones((n,), jnp.float32)
    zeros = lambda n: jnp.zeros((n,), jnp.float32)

    reg_w = dense((hidden, 1), jnp.float32)
    cls_w = dense((hidden, 3), jnp.float32)
    head_w = jnp.zeros((hidden, HEAD_PAD), jnp.float32)
    head_w = head_w.at[:, 0:1].set(reg_w).at[:, 1:4].set(cls_w).astype(jnp.bfloat16)
    head_b = jnp.zeros((HEAD_PAD,), jnp.float32)   # reg_b / cls_b are zero-init

    p = {
        "word_emb": dense((vocab, hidden), jnp.float32),
        "pos_emb": dense((max_pos, hidden), jnp.float32),
        "type_emb": dense((type_vocab, hidden), jnp.float32),
        "emb_ln_g": ones(hidden), "emb_ln_b": zeros(hidden),
        "pool_w": dense((hidden, hidden)), "pool_b": zeros(hidden),
        "head_w": head_w, "head_b": head_b,
        "layers": [],
    }
    for _ in range(layers):
        wq = dense((hidden, hidden))
        wk = dense((hidden, hidden))
        wv = dense((hidden, hidden))
        p["layers"].append({
            "wqkv": jnp.concatenate([wq, wk, wv], axis=1),   # fused (H, 3H)
            "bqkv": zeros(3 * hidden),
            "wo": dense((hidden, hidden)), "bo": zeros(hidden),
            "ln1_g": ones(hidden), "ln1_b": zeros(hidden),
            "wi": dense((hidden, inter)), "bi": zeros(inter),
            "wo2": dense((inter, hidden)), "bo2": zeros(hidden),
            "ln2_g": ones(hidden), "ln2_b": zeros(hidden),
        })
    return p


# ----------------------------------------------------------------------------
# Forward pass (glue in plain JAX, hot path in Pallas kernels)
# ----------------------------------------------------------------------------
def multilabel_forward(params, input_ids, attention_mask, *, heads):
    B, S = input_ids.shape
    H = params["word_emb"].shape[1]
    dh = H // heads
    M = B * S

    # Embedding gathers stay in JAX glue (no clean Pallas gather at this scale).
    x = (params["word_emb"][input_ids]
         + params["pos_emb"][jnp.arange(S)][None, :, :]
         + params["type_emb"][0][None, None, :])
    x2 = layer_norm(x.reshape(M, H), params["emb_ln_g"], params["emb_ln_b"])   # (M, H) bf16

    # Additive mask kept at (B, 1, S); reused per head via the attention index_map.
    add_mask = ((1.0 - attention_mask.astype(jnp.float32)) * -10000.0).reshape(B, 1, S)
    scale = 1.0 / math.sqrt(dh)

    for lp in params["layers"]:
        qkv = linear(x2, lp["wqkv"], lp["bqkv"])                     # (M, 3H) bf16
        ctx = attention(qkv, add_mask, batch=B, seq=S,
                        heads=heads, dh=dh, scale=scale)             # (M, H) bf16
        # Fused: attn output projection + residual + LayerNorm
        x2 = linear_res_ln(ctx, lp["wo"], lp["bo"], x2, lp["ln1_g"], lp["ln1_b"])
        # Fully fused FFN (up-proj + GELU + down-proj + residual + LayerNorm)
        x2 = ffn_res_ln(x2, lp["wi"], lp["bi"], lp["wo2"], lp["bo2"],
                        lp["ln2_g"], lp["ln2_b"])

    cls_tok = x2.reshape(B, S, H)[:, 0, :]                           # (B, H) bf16
    head_out = pooler_heads(cls_tok, params["pool_w"], params["pool_b"],
                            params["head_w"], params["head_b"])      # (B, 128) f32
    relatedness_score = head_out[:, 0]                               # (B,)
    entailment_logits = head_out[:, 1:4]                             # (B, 3)
    return relatedness_score, entailment_logits


# ----------------------------------------------------------------------------
if __name__ == "__main__":
    B, S = 2, 8
    VOCAB, HIDDEN, LAYERS, HEADS, INTER, MAXPOS, TYPES = 100, 32, 2, 2, 64, 16, 2

    key = jax.random.PRNGKey(0)
    pkey, ikey = jax.random.split(key)
    params = init_params(pkey, vocab=VOCAB, hidden=HIDDEN, layers=LAYERS,
                         heads=HEADS, inter=INTER, max_pos=MAXPOS, type_vocab=TYPES)

    input_ids = jax.random.randint(ikey, (B, S), 0, VOCAB, dtype=jnp.int32)
    attention_mask = jnp.ones((B, S), dtype=jnp.int32)

    fwd = jax.jit(functools.partial(multilabel_forward, heads=HEADS))
    rel, logits = fwd(params, input_ids, attention_mask)
    jax.block_until_ready((rel, logits))

    assert rel.shape == (B,) and rel.dtype == jnp.float32
    assert logits.shape == (B, 3) and logits.dtype == jnp.float32
    print("KERNEL_OK")
</pallas_src>

<mosaic_0001>
module attributes {stable_mosaic.version = 11 : i64} {
  func.func @_attention_kernel(%arg0: i32, %arg1: memref<8x96xbf16, #tpu.memory_space<vmem>>, %arg2: memref<1x1x8xf32, #tpu.memory_space<vmem>>, %arg3: memref<8x32xbf16, #tpu.memory_space<vmem>>) attributes {dimension_semantics = [#tpu.dimension_semantics<parallel>], iteration_bounds = array<i64: 2>, scalar_prefetch = 0 : i64, scratch_operands = 0 : i64, tpu.core_type = #tpu.core_type<tc>, window_params = [{transform_indices = @transform_0, window_bounds = array<i64: 8, 96>}, {transform_indices = @transform_1, window_bounds = array<i64: 1, 1, 8>}, {transform_indices = @transform_2, window_bounds = array<i64: 8, 32>}]} {
    %c0 = arith.constant 0 : index
    %c0_0 = arith.constant 0 : index
    %c0_1 = arith.constant 0 : index
    %0 = vector.load %arg2[%c0, %c0_0, %c0_1] : memref<1x1x8xf32, #tpu.memory_space<vmem>>, vector<1x1x8xf32>
    %1 = vector.shape_cast %0 : vector<1x1x8xf32> to vector<1x8xf32>
    %c0_2 = arith.constant 0 : index
    %c0_3 = arith.constant 0 : index
    %2 = vector.load %arg1[%c0_2, %c0_3] : memref<8x96xbf16, #tpu.memory_space<vmem>>, vector<8x96xbf16>
    %3 = vector.extract_strided_slice %2 {offsets = [0, 0], sizes = [8, 16], strides = [1, 1]} : vector<8x96xbf16> to vector<8x16xbf16>
    %4 = vector.extract_strided_slice %2 {offsets = [0, 32], sizes = [8, 16], strides = [1, 1]} : vector<8x96xbf16> to vector<8x16xbf16>
    %5 = vector.extract_strided_slice %2 {offsets = [0, 64], sizes = [8, 16], strides = [1, 1]} : vector<8x96xbf16> to vector<8x16xbf16>
    %cst = arith.constant dense<0.000000e+00> : vector<8x8xf32>
    %6 = tpu.matmul %3, %4, %cst {dimension_numbers = #tpu.dot_dimension_numbers<[1], [1], [0], [0], [0, 0, 1, 0], [], []>} : vector<8x16xbf16>, vector<8x16xbf16>, vector<8x8xf32> -> vector<8x8xf32>
    %cst_4 = arith.constant 2.500000e-01 : f32
    %7 = vector.broadcast %cst_4 : f32 to vector<8x8xf32>
    %8 = arith.mulf %6, %7 : vector<8x8xf32>
    %9 = vector.broadcast %1 : vector<1x8xf32> to vector<8x8xf32>
    %10 = arith.addf %8, %9 : vector<8x8xf32>
    %cst_5 = arith.constant dense<0xFF800000> : vector<8xf32>
    %11 = vector.multi_reduction <maximumf>, %10, %cst_5 [1] : vector<8x8xf32> to vector<8xf32>
    %12 = vector.shape_cast %11 : vector<8xf32> to vector<8x1xf32>
    %13 = vector.broadcast %12 : vector<8x1xf32> to vector<8x8xf32>
    %14 = arith.subf %10, %13 : vector<8x8xf32>
    %15 = math.exp %14 : vector<8x8xf32>
    %cst_6 = arith.constant dense<0.000000e+00> : vector<8xf32>
    %16 = vector.multi_reduction <add>, %15, %cst_6 [1] : vector<8x8xf32> to vector<8xf32>
    %17 = vector.shape_cast %16 : vector<8xf32> to vector<8x1xf32>
    %18 = tpu.reciprocal %17 {approx = true} : vector<8x1xf32> -> vector<8x1xf32>
    %19 = vector.broadcast %18 : vector<8x1xf32> to vector<8x8xf32>
    %20 = arith.mulf %15, %19 : vector<8x8xf32>
    %21 = arith.truncf %20 : vector<8x8xf32> to vector<8x8xbf16>
    %cst_7 = arith.constant dense<0.000000e+00> : vector<8x16xf32>
    %22 = tpu.matmul %21, %5, %cst_7 {dimension_numbers = #tpu.dot_dimension_numbers<[1], [0], [0], [1], [0, 0, 1, 1], [], []>} : vector<8x8xbf16>, vector<8x16xbf16>, vector<8x16xf32> -> vector<8x16xf32>
    %23 = arith.truncf %22 : vector<8x16xf32> to vector<8x16xbf16>
    %c0_8 = arith.constant 0 : index
    %c0_9 = arith.constant 0 : index
    %24 = vector.load %arg3[%c0_8, %c0_9] : memref<8x32xbf16, #tpu.memory_space<vmem>>, vector<8x16xbf16>
    tpu.vector_store %arg3[%c0_8, %c0_9], %23 {strides = array<i32>} : memref<8x32xbf16, #tpu.memory_space<vmem>>, vector<8x16xbf16>,
    %25 = vector.extract_strided_slice %2 {offsets = [0, 16], sizes = [8, 16], strides = [1, 1]} : vector<8x96xbf16> to vector<8x16xbf16>
    %26 = vector.extract_strided_slice %2 {offsets = [0, 48], sizes = [8, 16], strides = [1, 1]} : vector<8x96xbf16> to vector<8x16xbf16>
    %27 = vector.extract_strided_slice %2 {offsets = [0, 80], sizes = [8, 16], strides = [1, 1]} : vector<8x96xbf16> to vector<8x16xbf16>
    %cst_10 = arith.constant dense<0.000000e+00> : vector<8x8xf32>
    %28 = tpu.matmul %25, %26, %cst_10 {dimension_numbers = #tpu.dot_dimension_numbers<[1], [1], [0], [0], [0, 0, 1, 0], [], []>} : vector<8x16xbf16>, vector<8x16xbf16>, vector<8x8xf32> -> vector<8x8xf32>
    %cst_11 = arith.constant 2.500000e-01 : f32
    %29 = vector.broadcast %cst_11 : f32 to vector<8x8xf32>
    %30 = arith.mulf %28, %29 : vector<8x8xf32>
    %31 = vector.broadcast %1 : vector<1x8xf32> to vector<8x8xf32>
    %32 = arith.addf %30, %31 : vector<8x8xf32>
    %cst_12 = arith.constant dense<0xFF800000> : vector<8xf32>
    %33 = vector.multi_reduction <maximumf>, %32, %cst_12 [1] : vector<8x8xf32> to vector<8xf32>
    %34 = vector.shape_cast %33 : vector<8xf32> to vector<8x1xf32>
    %35 = vector.broadcast %34 : vector<8x1xf32> to vector<8x8xf32>
    %36 = arith.subf %32, %35 : vector<8x8xf32>
    %37 = math.exp %36 : vector<8x8xf32>
    %cst_13 = arith.constant dense<0.000000e+00> : vector<8xf32>
    %38 = vector.multi_reduction <add>, %37, %cst_13 [1] : vector<8x8xf32> to vector<8xf32>
    %39 = vector.shape_cast %38 : vector<8xf32> to vector<8x1xf32>
    %40 = tpu.reciprocal %39 {approx = true} : vector<8x1xf32> -> vector<8x1xf32>
    %41 = vector.broadcast %40 : vector<8x1xf32> to vector<8x8xf32>
    %42 = arith.mulf %37, %41 : vector<8x8xf32>
    %43 = arith.truncf %42 : vector<8x8xf32> to vector<8x8xbf16>
    %cst_14 = arith.constant dense<0.000000e+00> : vector<8x16xf32>
    %44 = tpu.matmul %43, %27, %cst_14 {dimension_numbers = #tpu.dot_dimension_numbers<[1], [0], [0], [1], [0, 0, 1, 1], [], []>} : vector<8x8xbf16>, vector<8x16xbf16>, vector<8x16xf32> -> vector<8x16xf32>
    %45 = arith.truncf %44 : vector<8x16xf32> to vector<8x16xbf16>
    %c0_15 = arith.constant 0 : index
    %c16 = arith.constant 16 : index
    %46 = vector.load %arg3[%c0_15, %c16] : memref<8x32xbf16, #tpu.memory_space<vmem>>, vector<8x16xbf16>
    tpu.vector_store %arg3[%c0_15, %c16], %45 {strides = array<i32>} : memref<8x32xbf16, #tpu.memory_space<vmem>>, vector<8x16xbf16>,
    return
  }
  func.func @transform_0(%arg0: i32) -> (i32, i32) {
    %c0_i32 = arith.constant 0 : i32
    %c0_i32_0 = arith.constant 0 : i32
    return %arg0, %c0_i32 : i32, i32
  }
  func.func @transform_1(%arg0: i32) -> (i32, i32, i32) {
    %c0_i32 = arith.constant 0 : i32
    %c0_i32_0 = arith.constant 0 : i32
    %c0_i32_1 = arith.constant 0 : i32
    return %arg0, %c0_i32, %c0_i32_0 : i32, i32, i32
  }
  func.func @transform_2(%arg0: i32) -> (i32, i32) {
    %c0_i32 = arith.constant 0 : i32
    %c0_i32_0 = arith.constant 0 : i32
    return %arg0, %c0_i32 : i32, i32
  }
}

module attributes {stable_mosaic.version = 11 : i64} {
  func.func @_layernorm_kernel(%arg0: i32, %arg1: memref<16x32xf32, #tpu.memory_space<vmem>>, %arg2: memref<1x32xf32, #tpu.memory_space<vmem>>, %arg3: memref<1x32xf32, #tpu.memory_space<vmem>>, %arg4: memref<16x32xbf16, #tpu.memory_space<vmem>>) attributes {dimension_semantics = [#tpu.dimension_semantics<parallel>], iteration_bounds = array<i64: 1>, scalar_prefetch = 0 : i64, scratch_operands = 0 : i64, tpu.core_type = #tpu.core_type<tc>, window_params = [{transform_indices = @transform_0, window_bounds = array<i64: 16, 32>}, {pipeline_mode = #tpu.pipeline_mode<synchronous>, transform_indices = @transform_1, window_bounds = array<i64: 1, 32>}, {pipeline_mode = #tpu.pipeline_mode<synchronous>, transform_indices = @transform_2, window_bounds = array<i64: 1, 32>}, {transform_indices = @transform_3, window_bounds = array<i64: 16, 32>}]} {
    %c0 = arith.constant 0 : index
    %c0_0 = arith.constant 0 : index
    %0 = vector.load %arg1[%c0, %c0_0] : memref<16x32xf32, #tpu.memory_space<vmem>>, vector<16x32xf32>
    %cst = arith.constant dense<0.000000e+00> : vector<16xf32>
    %1 = vector.multi_reduction <add>, %0, %cst [1] : vector<16x32xf32> to vector<16xf32>
    %2 = vector.shape_cast %1 : vector<16xf32> to vector<16x1xf32>
    %cst_1 = arith.constant 3.200000e+01 : f32
    %3 = vector.broadcast %cst_1 : f32 to vector<16x1xf32>
    %4 = arith.divf %2, %3 : vector<16x1xf32>
    %5 = vector.broadcast %4 : vector<16x1xf32> to vector<16x32xf32>
    %6 = arith.subf %0, %5 : vector<16x32xf32>
    %7 = arith.mulf %6, %6 : vector<16x32xf32>
    %cst_2 = arith.constant dense<0.000000e+00> : vector<16xf32>
    %8 = vector.multi_reduction <add>, %7, %cst_2 [1] : vector<16x32xf32> to vector<16xf32>
    %9 = vector.shape_cast %8 : vector<16xf32> to vector<16x1xf32>
    %cst_3 = arith.constant 3.200000e+01 : f32
    %10 = vector.broadcast %cst_3 : f32 to vector<16x1xf32>
    %11 = arith.divf %9, %10 : vector<16x1xf32>
    %cst_4 = arith.constant 9.99999996E-13 : f32
    %12 = vector.broadcast %cst_4 : f32 to vector<16x1xf32>
    %13 = arith.addf %11, %12 : vector<16x1xf32>
    %14 = math.rsqrt %13 : vector<16x1xf32>
    %15 = vector.broadcast %14 : vector<16x1xf32> to vector<16x32xf32>
    %16 = arith.mulf %6, %15 : vector<16x32xf32>
    %c0_5 = arith.constant 0 : index
    %c0_6 = arith.constant 0 : index
    %17 = vector.load %arg2[%c0_5, %c0_6] : memref<1x32xf32, #tpu.memory_space<vmem>>, vector<1x32xf32>
    %18 = vector.broadcast %17 : vector<1x32xf32> to vector<16x32xf32>
    %19 = arith.mulf %16, %18 : vector<16x32xf32>
    %c0_7 = arith.constant 0 : index
    %c0_8 = arith.constant 0 : index
    %20 = vector.load %arg3[%c0_7, %c0_8] : memref<1x32xf32, #tpu.memory_space<vmem>>, vector<1x32xf32>
    %21 = vector.broadcast %20 : vector<1x32xf32> to vector<16x32xf32>
    %22 = arith.addf %19, %21 : vector<16x32xf32>
    %23 = arith.truncf %22 : vector<16x32xf32> to vector<16x32xbf16>
    %c0_9 = arith.constant 0 : index
    %c0_10 = arith.constant 0 : index
    %24 = vector.load %arg4[%c0_9, %c0_10] : memref<16x32xbf16, #tpu.memory_space<vmem>>, vector<16x32xbf16>
    tpu.vector_store %arg4[%c0_9, %c0_10], %23 {strides = array<i32>} : memref<16x32xbf16, #tpu.memory_space<vmem>>, vector<16x32xbf16>,
    return
  }
  func.func @transform_0(%arg0: i32) -> (i32, i32) {
    %c0_i32 = arith.constant 0 : i32
    %c0_i32_0 = arith.constant 0 : i32
    return %arg0, %c0_i32 : i32, i32
  }
  func.func @transform_1(%arg0: i32) -> (i32, i32) {
    %c0_i32 = arith.constant 0 : i32
    %c0_i32_0 = arith.constant 0 : i32
    %c0_i32_1 = arith.constant 0 : i32
    return %c0_i32, %c0_i32_0 : i32, i32
  }
  func.func @transform_2(%arg0: i32) -> (i32, i32) {
    %c0_i32 = arith.constant 0 : i32
    %c0_i32_0 = arith.constant 0 : i32
    %c0_i32_1 = arith.constant 0 : i32
    return %c0_i32, %c0_i32_0 : i32, i32
  }
  func.func @transform_3(%arg0: i32) -> (i32, i32) {
    %c0_i32 = arith.constant 0 : i32
    %c0_i32_0 = arith.constant 0 : i32
    return %arg0, %c0_i32 : i32, i32
  }
}

module attributes {stable_mosaic.version = 11 : i64} {
  func.func @_linear_kernel(%arg0: i32, %arg1: i32, %arg2: i32, %arg3: memref<16x32xbf16, #tpu.memory_space<vmem>>, %arg4: memref<32x96xbf16, #tpu.memory_space<vmem>>, %arg5: memref<1x96xf32, #tpu.memory_space<vmem>>, %arg6: memref<16x96xbf16, #tpu.memory_space<vmem>>, %arg7: memref<16x96xf32, #tpu.memory_space<vmem>>) attributes {dimension_semantics = [#tpu.dimension_semantics<parallel>, #tpu.dimension_semantics<parallel>, #tpu.dimension_semantics<arbitrary>], iteration_bounds = array<i64: 1, 1, 1>, scalar_prefetch = 0 : i64, scratch_operands = 1 : i64, tpu.core_type = #tpu.core_type<tc>, window_params = [{transform_indices = @transform_0, window_bounds = array<i64: 16, 32>}, {transform_indices = @transform_1, window_bounds = array<i64: 32, 96>}, {transform_indices = @transform_2, window_bounds = array<i64: 1, 96>}, {transform_indices = @transform_3, window_bounds = array<i64: 16, 96>}]} {
    %c0_i32 = arith.constant 0 : i32
    %0 = arith.cmpi eq, %arg2, %c0_i32 : i32
    %1 = arith.extui %0 : i1 to i32
    %c0_i32_0 = arith.constant 0 : i32
    %2 = arith.cmpi ne, %1, %c0_i32_0 : i32
    scf.if %2 {
      %cst_10 = arith.constant 0.000000e+00 : f32
      %12 = vector.broadcast %cst_10 : f32 to vector<16x96xf32>
      %c0_11 = arith.constant 0 : index
      %c0_12 = arith.constant 0 : index
      %13 = vector.load %arg7[%c0_11, %c0_12] : memref<16x96xf32, #tpu.memory_space<vmem>>, vector<16x96xf32>
      tpu.vector_store %arg7[%c0_11, %c0_12], %12 {strides = array<i32>} : memref<16x96xf32, #tpu.memory_space<vmem>>, vector<16x96xf32>,
    } else {
    }
    %c0 = arith.constant 0 : index
    %c0_1 = arith.constant 0 : index
    %3 = vector.load %arg7[%c0, %c0_1] : memref<16x96xf32, #tpu.memory_space<vmem>>, vector<16x96xf32>
    %c0_2 = arith.constant 0 : index
    %c0_3 = arith.constant 0 : index
    %4 = vector.load %arg3[%c0_2, %c0_3] : memref<16x32xbf16, #tpu.memory_space<vmem>>, vector<16x32xbf16>
    %c0_4 = arith.constant 0 : index
    %c0_5 = arith.constant 0 : index
    %5 = vector.load %arg4[%c0_4, %c0_5] : memref<32x96xbf16, #tpu.memory_space<vmem>>, vector<32x96xbf16>
    %cst = arith.constant dense<0.000000e+00> : vector<16x96xf32>
    %6 = tpu.matmul %4, %5, %cst {dimension_numbers = #tpu.dot_dimension_numbers<[1], [0], [0], [1], [0, 0, 1, 1], [], []>} : vector<16x32xbf16>, vector<32x96xbf16>, vector<16x96xf32> -> vector<16x96xf32>
    %7 = arith.addf %3, %6 : vector<16x96xf32>
    %c0_6 = arith.constant 0 : index
    %c0_7 = arith.constant 0 : index
    %8 = vector.load %arg7[%c0_6, %c0_7] : memref<16x96xf32, #tpu.memory_space<vmem>>, vector<16x96xf32>
    tpu.vector_store %arg7[%c0_6, %c0_7], %7 {strides = array<i32>} : memref<16x96xf32, #tpu.memory_space<vmem>>, vector<16x96xf32>,
    %c0_i32_8 = arith.constant 0 : i32
    %9 = arith.cmpi eq, %arg2, %c0_i32_8 : i32
    %10 = arith.extui %9 : i1 to i32
    %c0_i32_9 = arith.constant 0 : i32
    %11 = arith.cmpi ne, %10, %c0_i32_9 : i32
    scf.if %11 {
      %c0_10 = arith.constant 0 : index
      %c0_11 = arith.constant 0 : index
      %12 = vector.load %arg7[%c0_10, %c0_11] : memref<16x96xf32, #tpu.memory_space<vmem>>, vector<16x96xf32>
      %c0_12 = arith.constant 0 : index
      %c0_13 = arith.constant 0 : index
      %13 = vector.load %arg5[%c0_12, %c0_13] : memref<1x96xf32, #tpu.memory_space<vmem>>, vector<1x96xf32>
      %14 = vector.broadcast %13 : vector<1x96xf32> to vector<16x96xf32>
      %15 = arith.addf %12, %14 : vector<16x96xf32>
      %16 = arith.truncf %15 : vector<16x96xf32> to vector<16x96xbf16>
      %c0_14 = arith.constant 0 : index
      %c0_15 = arith.constant 0 : index
      %17 = vector.load %arg6[%c0_14, %c0_15] : memref<16x96xbf16, #tpu.memory_space<vmem>>, vector<16x96xbf16>
      tpu.vector_store %arg6[%c0_14, %c0_15], %16 {strides = array<i32>} : memref<16x96xbf16, #tpu.memory_space<vmem>>, vector<16x96xbf16>,
    } else {
    }
    return
  }
  func.func @transform_0(%arg0: i32, %arg1: i32, %arg2: i32) -> (i32, i32) {
    %c0_i32 = arith.constant 0 : i32
    return %arg0, %arg2 : i32, i32
  }
  func.func @transform_1(%arg0: i32, %arg1: i32, %arg2: i32) -> (i32, i32) {
    %c0_i32 = arith.constant 0 : i32
    return %arg2, %arg1 : i32, i32
  }
  func.func @transform_2(%arg0: i32, %arg1: i32, %arg2: i32) -> (i32, i32) {
    %c0_i32 = arith.constant 0 : i32
    %c0_i32_0 = arith.constant 0 : i32
    return %c0_i32, %arg1 : i32, i32
  }
  func.func @transform_3(%arg0: i32, %arg1: i32, %arg2: i32) -> (i32, i32) {
    %c0_i32 = arith.constant 0 : i32
    return %arg0, %arg1 : i32, i32
  }
}

module attributes {stable_mosaic.version = 11 : i64} {
  func.func @_linear_res_ln_kernel(%arg0: i32, %arg1: memref<16x32xbf16, #tpu.memory_space<vmem>>, %arg2: memref<32x32xbf16, #tpu.memory_space<vmem>>, %arg3: memref<1x32xf32, #tpu.memory_space<vmem>>, %arg4: memref<16x32xbf16, #tpu.memory_space<vmem>>, %arg5: memref<1x32xf32, #tpu.memory_space<vmem>>, %arg6: memref<1x32xf32, #tpu.memory_space<vmem>>, %arg7: memref<16x32xbf16, #tpu.memory_space<vmem>>) attributes {dimension_semantics = [#tpu.dimension_semantics<parallel>], iteration_bounds = array<i64: 1>, scalar_prefetch = 0 : i64, scratch_operands = 0 : i64, tpu.core_type = #tpu.core_type<tc>, window_params = [{transform_indices = @transform_0, window_bounds = array<i64: 16, 32>}, {pipeline_mode = #tpu.pipeline_mode<synchronous>, transform_indices = @transform_1, window_bounds = array<i64: 32, 32>}, {pipeline_mode = #tpu.pipeline_mode<synchronous>, transform_indices = @transform_2, window_bounds = array<i64: 1, 32>}, {transform_indices = @transform_3, window_bounds = array<i64: 16, 32>}, {pipeline_mode = #tpu.pipeline_mode<synchronous>, transform_indices = @transform_4, window_bounds = array<i64: 1, 32>}, {pipeline_mode = #tpu.pipeline_mode<synchronous>, transform_indices = @transform_5, window_bounds = array<i64: 1, 32>}, {transform_indices = @transform_6, window_bounds = array<i64: 16, 32>}]} {
    %c0 = arith.constant 0 : index
    %c0_0 = arith.constant 0 : index
    %0 = vector.load %arg1[%c0, %c0_0] : memref<16x32xbf16, #tpu.memory_space<vmem>>, vector<16x32xbf16>
    %c0_1 = arith.constant 0 : index
    %c0_2 = arith.constant 0 : index
    %1 = vector.load %arg2[%c0_1, %c0_2] : memref<32x32xbf16, #tpu.memory_space<vmem>>, vector<32x32xbf16>
    %cst = arith.constant dense<0.000000e+00> : vector<16x32xf32>
    %2 = tpu.matmul %0, %1, %cst {dimension_numbers = #tpu.dot_dimension_numbers<[1], [0], [0], [1], [0, 0, 1, 1], [], []>} : vector<16x32xbf16>, vector<32x32xbf16>, vector<16x32xf32> -> vector<16x32xf32>
    %c0_3 = arith.constant 0 : index
    %c0_4 = arith.constant 0 : index
    %3 = vector.load %arg3[%c0_3, %c0_4] : memref<1x32xf32, #tpu.memory_space<vmem>>, vector<1x32xf32>
    %4 = vector.broadcast %3 : vector<1x32xf32> to vector<16x32xf32>
    %5 = arith.addf %2, %4 : vector<16x32xf32>
    %c0_5 = arith.constant 0 : index
    %c0_6 = arith.constant 0 : index
    %6 = vector.load %arg4[%c0_5, %c0_6] : memref<16x32xbf16, #tpu.memory_space<vmem>>, vector<16x32xbf16>
    %7 = arith.extf %6 : vector<16x32xbf16> to vector<16x32xf32>
    %8 = arith.addf %5, %7 : vector<16x32xf32>
    %cst_7 = arith.constant dense<0.000000e+00> : vector<16xf32>
    %9 = vector.multi_reduction <add>, %8, %cst_7 [1] : vector<16x32xf32> to vector<16xf32>
    %10 = vector.shape_cast %9 : vector<16xf32> to vector<16x1xf32>
    %cst_8 = arith.constant 3.200000e+01 : f32
    %11 = vector.broadcast %cst_8 : f32 to vector<16x1xf32>
    %12 = arith.divf %10, %11 : vector<16x1xf32>
    %13 = vector.broadcast %12 : vector<16x1xf32> to vector<16x32xf32>
    %14 = arith.subf %8, %13 : vector<16x32xf32>
    %15 = arith.mulf %14, %14 : vector<16x32xf32>
    %cst_9 = arith.constant dense<0.000000e+00> : vector<16xf32>
    %16 = vector.multi_reduction <add>, %15, %cst_9 [1] : vector<16x32xf32> to vector<16xf32>
    %17 = vector.shape_cast %16 : vector<16xf32> to vector<16x1xf32>
    %cst_10 = arith.constant 3.200000e+01 : f32
    %18 = vector.broadcast %cst_10 : f32 to vector<16x1xf32>
    %19 = arith.divf %17, %18 : vector<16x1xf32>
    %cst_11 = arith.constant 9.99999996E-13 : f32
    %20 = vector.broadcast %cst_11 : f32 to vector<16x1xf32>
    %21 = arith.addf %19, %20 : vector<16x1xf32>
    %22 = math.rsqrt %21 : vector<16x1xf32>
    %23 = vector.broadcast %22 : vector<16x1xf32> to vector<16x32xf32>
    %24 = arith.mulf %14, %23 : vector<16x32xf32>
    %c0_12 = arith.constant 0 : index
    %c0_13 = arith.constant 0 : index
    %25 = vector.load %arg5[%c0_12, %c0_13] : memref<1x32xf32, #tpu.memory_space<vmem>>, vector<1x32xf32>
    %26 = vector.broadcast %25 : vector<1x32xf32> to vector<16x32xf32>
    %27 = arith.mulf %24, %26 : vector<16x32xf32>
    %c0_14 = arith.constant 0 : index
    %c0_15 = arith.constant 0 : index
    %28 = vector.load %arg6[%c0_14, %c0_15] : memref<1x32xf32, #tpu.memory_space<vmem>>, vector<1x32xf32>
    %29 = vector.broadcast %28 : vector<1x32xf32> to vector<16x32xf32>
    %30 = arith.addf %27, %29 : vector<16x32xf32>
    %31 = arith.truncf %30 : vector<16x32xf32> to vector<16x32xbf16>
    %c0_16 = arith.constant 0 : index
    %c0_17 = arith.constant 0 : index
    %32 = vector.load %arg7[%c0_16, %c0_17] : memref<16x32xbf16, #tpu.memory_space<vmem>>, vector<16x32xbf16>
    tpu.vector_store %arg7[%c0_16, %c0_17], %31 {strides = array<i32>} : memref<16x32xbf16, #tpu.memory_space<vmem>>, vector<16x32xbf16>,
    return
  }
  func.func @transform_0(%arg0: i32) -> (i32, i32) {
    %c0_i32 = arith.constant 0 : i32
    %c0_i32_0 = arith.constant 0 : i32
    return %arg0, %c0_i32 : i32, i32
  }
  func.func @transform_1(%arg0: i32) -> (i32, i32) {
    %c0_i32 = arith.constant 0 : i32
    %c0_i32_0 = arith.constant 0 : i32
    %c0_i32_1 = arith.constant 0 : i32
    return %c0_i32, %c0_i32_0 : i32, i32
  }
  func.func @transform_2(%arg0: i32) -> (i32, i32) {
    %c0_i32 = arith.constant 0 : i32
    %c0_i32_0 = arith.constant 0 : i32
    %c0_i32_1 = arith.constant 0 : i32
    return %c0_i32, %c0_i32_0 : i32, i32
  }
  func.func @transform_3(%arg0: i32) -> (i32, i32) {
    %c0_i32 = arith.constant 0 : i32
    %c0_i32_0 = arith.constant 0 : i32
    return %arg0, %c0_i32 : i32, i32
  }
  func.func @transform_4(%arg0: i32) -> (i32, i32) {
    %c0_i32 = arith.constant 0 : i32
    %c0_i32_0 = arith.constant 0 : i32
    %c0_i32_1 = arith.constant 0 : i32
    return %c0_i32, %c0_i32_0 : i32, i32
  }
  func.func @transform_5(%arg0: i32) -> (i32, i32) {
    %c0_i32 = arith.constant 0 : i32
    %c0_i32_0 = arith.constant 0 : i32
    %c0_i32_1 = arith.constant 0 : i32
    return %c0_i32, %c0_i32_0 : i32, i32
  }
  func.func @transform_6(%arg0: i32) -> (i32, i32) {
    %c0_i32 = arith.constant 0 : i32
    %c0_i32_0 = arith.constant 0 : i32
    return %arg0, %c0_i32 : i32, i32
  }
}

module attributes {stable_mosaic.version = 11 : i64} {
  func.func @_pooler_heads_kernel(%arg0: i32, %arg1: memref<2x32xbf16, #tpu.memory_space<vmem>>, %arg2: memref<32x32xbf16, #tpu.memory_space<vmem>>, %arg3: memref<1x32xf32, #tpu.memory_space<vmem>>, %arg4: memref<32x128xbf16, #tpu.memory_space<vmem>>, %arg5: memref<1x128xf32, #tpu.memory_space<vmem>>, %arg6: memref<2x128xf32, #tpu.memory_space<vmem>>) attributes {dimension_semantics = [#tpu.dimension_semantics<arbitrary>], iteration_bounds = array<i64: 1>, scalar_prefetch = 0 : i64, scratch_operands = 0 : i64, tpu.core_type = #tpu.core_type<tc>, window_params = [{pipeline_mode = #tpu.pipeline_mode<synchronous>, transform_indices = @transform_0, window_bounds = array<i64: 2, 32>}, {pipeline_mode = #tpu.pipeline_mode<synchronous>, transform_indices = @transform_1, window_bounds = array<i64: 32, 32>}, {pipeline_mode = #tpu.pipeline_mode<synchronous>, transform_indices = @transform_2, window_bounds = array<i64: 1, 32>}, {pipeline_mode = #tpu.pipeline_mode<synchronous>, transform_indices = @transform_3, window_bounds = array<i64: 32, 128>}, {pipeline_mode = #tpu.pipeline_mode<synchronous>, transform_indices = @transform_4, window_bounds = array<i64: 1, 128>}, {pipeline_mode = #tpu.pipeline_mode<synchronous>, transform_indices = @transform_5, window_bounds = array<i64: 2, 128>}]} {
    %c0 = arith.constant 0 : index
    %c0_0 = arith.constant 0 : index
    %0 = vector.load %arg1[%c0, %c0_0] : memref<2x32xbf16, #tpu.memory_space<vmem>>, vector<2x32xbf16>
    %c0_1 = arith.constant 0 : index
    %c0_2 = arith.constant 0 : index
    %1 = vector.load %arg2[%c0_1, %c0_2] : memref<32x32xbf16, #tpu.memory_space<vmem>>, vector<32x32xbf16>
    %cst = arith.constant dense<0.000000e+00> : vector<2x32xf32>
    %2 = tpu.matmul %0, %1, %cst {dimension_numbers = #tpu.dot_dimension_numbers<[1], [0], [0], [1], [0, 0, 1, 1], [], []>} : vector<2x32xbf16>, vector<32x32xbf16>, vector<2x32xf32> -> vector<2x32xf32>
    %c0_3 = arith.constant 0 : index
    %c0_4 = arith.constant 0 : index
    %3 = vector.load %arg3[%c0_3, %c0_4] : memref<1x32xf32, #tpu.memory_space<vmem>>, vector<1x32xf32>
    %4 = vector.broadcast %3 : vector<1x32xf32> to vector<2x32xf32>
    %5 = arith.addf %2, %4 : vector<2x32xf32>
    %6 = math.tanh %5 : vector<2x32xf32>
    %7 = arith.truncf %6 : vector<2x32xf32> to vector<2x32xbf16>
    %c0_5 = arith.constant 0 : index
    %c0_6 = arith.constant 0 : index
    %8 = vector.load %arg4[%c0_5, %c0_6] : memref<32x128xbf16, #tpu.memory_space<vmem>>, vector<32x128xbf16>
    %cst_7 = arith.constant dense<0.000000e+00> : vector<2x128xf32>
    %9 = tpu.matmul %7, %8, %cst_7 {dimension_numbers = #tpu.dot_dimension_numbers<[1], [0], [0], [1], [0, 0, 1, 1], [], []>} : vector<2x32xbf16>, vector<32x128xbf16>, vector<2x128xf32> -> vector<2x128xf32>
    %c0_8 = arith.constant 0 : index
    %c0_9 = arith.constant 0 : index
    %10 = vector.load %arg5[%c0_8, %c0_9] : memref<1x128xf32, #tpu.memory_space<vmem>>, vector<1x128xf32>
    %11 = vector.broadcast %10 : vector<1x128xf32> to vector<2x128xf32>
    %12 = arith.addf %9, %11 : vector<2x128xf32>
    %c0_10 = arith.constant 0 : index
    %c0_11 = arith.constant 0 : index
    %13 = vector.load %arg6[%c0_10, %c0_11] : memref<2x128xf32, #tpu.memory_space<vmem>>, vector<2x128xf32>
    tpu.vector_store %arg6[%c0_10, %c0_11], %12 {strides = array<i32>} : memref<2x128xf32, #tpu.memory_space<vmem>>, vector<2x128xf32>,
    return
  }
  func.func @transform_0(%arg0: i32) -> (i32, i32) {
    %c0_i32 = arith.constant 0 : i32
    %c0_i32_0 = arith.constant 0 : i32
    %c0_i32_1 = arith.constant 0 : i32
    return %c0_i32, %c0_i32_0 : i32, i32
  }
  func.func @transform_1(%arg0: i32) -> (i32, i32) {
    %c0_i32 = arith.constant 0 : i32
    %c0_i32_0 = arith.constant 0 : i32
    %c0_i32_1 = arith.constant 0 : i32
    return %c0_i32, %c0_i32_0 : i32, i32
  }
  func.func @transform_2(%arg0: i32) -> (i32, i32) {
    %c0_i32 = arith.constant 0 : i32
    %c0_i32_0 = arith.constant 0 : i32
    %c0_i32_1 = arith.constant 0 : i32
    return %c0_i32, %c0_i32_0 : i32, i32
  }
  func.func @transform_3(%arg0: i32) -> (i32, i32) {
    %c0_i32 = arith.constant 0 : i32
    %c0_i32_0 = arith.constant 0 : i32
    %c0_i32_1 = arith.constant 0 : i32
    return %c0_i32, %c0_i32_0 : i32, i32
  }
  func.func @transform_4(%arg0: i32) -> (i32, i32) {
    %c0_i32 = arith.constant 0 : i32
    %c0_i32_0 = arith.constant 0 : i32
    %c0_i32_1 = arith.constant 0 : i32
    return %c0_i32, %c0_i32_0 : i32, i32
  }
  func.func @transform_5(%arg0: i32) -> (i32, i32) {
    %c0_i32 = arith.constant 0 : i32
    %c0_i32_0 = arith.constant 0 : i32
    %c0_i32_1 = arith.constant 0 : i32
    return %c0_i32, %c0_i32_0 : i32, i32
  }
}

module attributes {stable_mosaic.version = 11 : i64} {
  func.func @_ffn_kernel(%arg0: i32, %arg1: memref<16x32xbf16, #tpu.memory_space<vmem>>, %arg2: memref<32x64xbf16, #tpu.memory_space<vmem>>, %arg3: memref<1x64xf32, #tpu.memory_space<vmem>>, %arg4: memref<64x32xbf16, #tpu.memory_space<vmem>>, %arg5: memref<1x32xf32, #tpu.memory_space<vmem>>, %arg6: memref<1x32xf32, #tpu.memory_space<vmem>>, %arg7: memref<1x32xf32, #tpu.memory_space<vmem>>, %arg8: memref<16x32xbf16, #tpu.memory_space<vmem>>) attributes {dimension_semantics = [#tpu.dimension_semantics<parallel>], iteration_bounds = array<i64: 1>, scalar_prefetch = 0 : i64, scratch_operands = 0 : i64, tpu.core_type = #tpu.core_type<tc>, window_params = [{transform_indices = @transform_0, window_bounds = array<i64: 16, 32>}, {pipeline_mode = #tpu.pipeline_mode<synchronous>, transform_indices = @transform_1, window_bounds = array<i64: 32, 64>}, {pipeline_mode = #tpu.pipeline_mode<synchronous>, transform_indices = @transform_2, window_bounds = array<i64: 1, 64>}, {pipeline_mode = #tpu.pipeline_mode<synchronous>, transform_indices = @transform_3, window_bounds = array<i64: 64, 32>}, {pipeline_mode = #tpu.pipeline_mode<synchronous>, transform_indices = @transform_4, window_bounds = array<i64: 1, 32>}, {pipeline_mode = #tpu.pipeline_mode<synchronous>, transform_indices = @transform_5, window_bounds = array<i64: 1, 32>}, {pipeline_mode = #tpu.pipeline_mode<synchronous>, transform_indices = @transform_6, window_bounds = array<i64: 1, 32>}, {transform_indices = @transform_7, window_bounds = array<i64: 16, 32>}]} {
    %c0 = arith.constant 0 : index
    %c0_0 = arith.constant 0 : index
    %0 = vector.load %arg1[%c0, %c0_0] : memref<16x32xbf16, #tpu.memory_space<vmem>>, vector<16x32xbf16>
    %c0_1 = arith.constant 0 : index
    %c0_2 = arith.constant 0 : index
    %1 = vector.load %arg2[%c0_1, %c0_2] : memref<32x64xbf16, #tpu.memory_space<vmem>>, vector<32x64xbf16>
    %cst = arith.constant dense<0.000000e+00> : vector<16x64xf32>
    %2 = tpu.matmul %0, %1, %cst {dimension_numbers = #tpu.dot_dimension_numbers<[1], [0], [0], [1], [0, 0, 1, 1], [], []>} : vector<16x32xbf16>, vector<32x64xbf16>, vector<16x64xf32> -> vector<16x64xf32>
    %c0_3 = arith.constant 0 : index
    %c0_4 = arith.constant 0 : index
    %3 = vector.load %arg3[%c0_3, %c0_4] : memref<1x64xf32, #tpu.memory_space<vmem>>, vector<1x64xf32>
    %4 = vector.broadcast %3 : vector<1x64xf32> to vector<16x64xf32>
    %5 = arith.addf %2, %4 : vector<16x64xf32>
    %cst_5 = arith.constant 5.000000e-01 : f32
    %6 = vector.broadcast %cst_5 : f32 to vector<16x64xf32>
    %7 = arith.mulf %6, %5 : vector<16x64xf32>
    %cst_6 = arith.constant 0.707106769 : f32
    %8 = vector.broadcast %cst_6 : f32 to vector<16x64xf32>
    %9 = arith.mulf %5, %8 : vector<16x64xf32>
    %10 = math.erf %9 : vector<16x64xf32>
    %cst_7 = arith.constant 1.000000e+00 : f32
    %11 = vector.broadcast %cst_7 : f32 to vector<16x64xf32>
    %12 = arith.addf %11, %10 : vector<16x64xf32>
    %13 = arith.mulf %7, %12 : vector<16x64xf32>
    %14 = arith.truncf %13 : vector<16x64xf32> to vector<16x64xbf16>
    %c0_8 = arith.constant 0 : index
    %c0_9 = arith.constant 0 : index
    %15 = vector.load %arg4[%c0_8, %c0_9] : memref<64x32xbf16, #tpu.memory_space<vmem>>, vector<64x32xbf16>
    %cst_10 = arith.constant dense<0.000000e+00> : vector<16x32xf32>
    %16 = tpu.matmul %14, %15, %cst_10 {dimension_numbers = #tpu.dot_dimension_numbers<[1], [0], [0], [1], [0, 0, 1, 1], [], []>} : vector<16x64xbf16>, vector<64x32xbf16>, vector<16x32xf32> -> vector<16x32xf32>
    %c0_11 = arith.constant 0 : index
    %c0_12 = arith.constant 0 : index
    %17 = vector.load %arg5[%c0_11, %c0_12] : memref<1x32xf32, #tpu.memory_space<vmem>>, vector<1x32xf32>
    %18 = vector.broadcast %17 : vector<1x32xf32> to vector<16x32xf32>
    %19 = arith.addf %16, %18 : vector<16x32xf32>
    %20 = arith.extf %0 : vector<16x32xbf16> to vector<16x32xf32>
    %21 = arith.addf %19, %20 : vector<16x32xf32>
    %cst_13 = arith.constant dense<0.000000e+00> : vector<16xf32>
    %22 = vector.multi_reduction <add>, %21, %cst_13 [1] : vector<16x32xf32> to vector<16xf32>
    %23 = vector.shape_cast %22 : vector<16xf32> to vector<16x1xf32>
    %cst_14 = arith.constant 3.200000e+01 : f32
    %24 = vector.broadcast %cst_14 : f32 to vector<16x1xf32>
    %25 = arith.divf %23, %24 : vector<16x1xf32>
    %26 = vector.broadcast %25 : vector<16x1xf32> to vector<16x32xf32>
    %27 = arith.subf %21, %26 : vector<16x32xf32>
    %28 = arith.mulf %27, %27 : vector<16x32xf32>
    %cst_15 = arith.constant dense<0.000000e+00> : vector<16xf32>
    %29 = vector.multi_reduction <add>, %28, %cst_15 [1] : vector<16x32xf32> to vector<16xf32>
    %30 = vector.shape_cast %29 : vector<16xf32> to vector<16x1xf32>
    %cst_16 = arith.constant 3.200000e+01 : f32
    %31 = vector.broadcast %cst_16 : f32 to vector<16x1xf32>
    %32 = arith.divf %30, %31 : vector<16x1xf32>
    %cst_17 = arith.constant 9.99999996E-13 : f32
    %33 = vector.broadcast %cst_17 : f32 to vector<16x1xf32>
    %34 = arith.addf %32, %33 : vector<16x1xf32>
    %35 = math.rsqrt %34 : vector<16x1xf32>
    %36 = vector.broadcast %35 : vector<16x1xf32> to vector<16x32xf32>
    %37 = arith.mulf %27, %36 : vector<16x32xf32>
    %c0_18 = arith.constant 0 : index
    %c0_19 = arith.constant 0 : index
    %38 = vector.load %arg6[%c0_18, %c0_19] : memref<1x32xf32, #tpu.memory_space<vmem>>, vector<1x32xf32>
    %39 = vector.broadcast %38 : vector<1x32xf32> to vector<16x32xf32>
    %40 = arith.mulf %37, %39 : vector<16x32xf32>
    %c0_20 = arith.constant 0 : index
    %c0_21 = arith.constant 0 : index
    %41 = vector.load %arg7[%c0_20, %c0_21] : memref<1x32xf32, #tpu.memory_space<vmem>>, vector<1x32xf32>
    %42 = vector.broadcast %41 : vector<1x32xf32> to vector<16x32xf32>
    %43 = arith.addf %40, %42 : vector<16x32xf32>
    %44 = arith.truncf %43 : vector<16x32xf32> to vector<16x32xbf16>
    %c0_22 = arith.constant 0 : index
    %c0_23 = arith.constant 0 : index
    %45 = vector.load %arg8[%c0_22, %c0_23] : memref<16x32xbf16, #tpu.memory_space<vmem>>, vector<16x32xbf16>
    tpu.vector_store %arg8[%c0_22, %c0_23], %44 {strides = array<i32>} : memref<16x32xbf16, #tpu.memory_space<vmem>>, vector<16x32xbf16>,
    return
  }
  func.func @transform_0(%arg0: i32) -> (i32, i32) {
    %c0_i32 = arith.constant 0 : i32
    %c0_i32_0 = arith.constant 0 : i32
    return %arg0, %c0_i32 : i32, i32
  }
  func.func @transform_1(%arg0: i32) -> (i32, i32) {
    %c0_i32 = arith.constant 0 : i32
    %c0_i32_0 = arith.constant 0 : i32
    %c0_i32_1 = arith.constant 0 : i32
    return %c0_i32, %c0_i32_0 : i32, i32
  }
  func.func @transform_2(%arg0: i32) -> (i32, i32) {
    %c0_i32 = arith.constant 0 : i32
    %c0_i32_0 = arith.constant 0 : i32
    %c0_i32_1 = arith.constant 0 : i32
    return %c0_i32, %c0_i32_0 : i32, i32
  }
  func.func @transform_3(%arg0: i32) -> (i32, i32) {
    %c0_i32 = arith.constant 0 : i32
    %c0_i32_0 = arith.constant 0 : i32
    %c0_i32_1 = arith.constant 0 : i32
    return %c0_i32, %c0_i32_0 : i32, i32
  }
  func.func @transform_4(%arg0: i32) -> (i32, i32) {
    %c0_i32 = arith.constant 0 : i32
    %c0_i32_0 = arith.constant 0 : i32
    %c0_i32_1 = arith.constant 0 : i32
    return %c0_i32, %c0_i32_0 : i32, i32
  }
  func.func @transform_5(%arg0: i32) -> (i32, i32) {
    %c0_i32 = arith.constant 0 : i32
    %c0_i32_0 = arith.constant 0 : i32
    %c0_i32_1 = arith.constant 0 : i32
    return %c0_i32, %c0_i32_0 : i32, i32
  }
  func.func @transform_6(%arg0: i32) -> (i32, i32) {
    %c0_i32 = arith.constant 0 : i32
    %c0_i32_0 = arith.constant 0 : i32
    %c0_i32_1 = arith.constant 0 : i32
    return %c0_i32, %c0_i32_0 : i32, i32
  }
  func.func @transform_7(%arg0: i32) -> (i32, i32) {
    %c0_i32 = arith.constant 0 : i32
    %c0_i32_0 = arith.constant 0 : i32
    return %arg0, %c0_i32 : i32, i32
  }
}

</mosaic_0001>

<bundles_post_ra>
// kernel: multilabel_forward.10
= control target key start
LH: loop header
LB: loop body
LE: loop exit
PB: predicated region body
PF: predicated region fallthrough
CT: control target
= control target key end

     0   :  { %vm16_vm0 = vcmask 261120   ;;  %vm70_vm1 = vcmask 257024   ;;  %s129_s0 = inlined_call_operand.vmem [shape: f32[16,32], index: 0, kind: input, shape index: {}]   ;;  %s130_s1 = inlined_call_operand.vmem [shape: f32[1,32], index: 1, kind: input, shape index: {}]   ;;  %s131_s2 = inlined_call_operand.vmem [shape: f32[1,32], index: 2, kind: input, shape index: {}]   ;;  %s132_s3 = inlined_call_operand.vmem [shape: bf16[16,32], index: 3, kind: output, shape index: {}]  }
   0x1   :  { %v14_v0 = vld [vmem:[%s129_s0] sm:$0xff]  ;;  %v15_v1 = vld [vmem:[%s129_s0 + $0x8] sm:$0xff] }
   0x2   :  { %v17_v2 = vsel %vm16_vm0, %v14_v0, 0.0  ;;  %v20_v3 = vsel %vm16_vm0, %v15_v1, 0.0  ;;  %v77_v21 = vld [vmem:[%s130_s1] ss:$0 sm:$0xff] }
   0x3   :  { %18 = vadd.xlane.f32.xlu0 %v17_v2  ;;  %v78_v23 = vld [vmem:[%s131_s2] ss:$0 sm:$0xff] }
   0x7   :  { %21 = vadd.xlane.f32.xlu0 %v20_v3 }
  0x8c   :  { %v19_v4 = vpop.xlane.xlu0 %18 }
  0x8d   :  { %v24_v5 = vmul.f32 0.03125, %v19_v4 }
  0x8f   :  { %v26_v6 = vsub.f32 %v14_v0, %v24_v5 }
  0x90   :  { %v22_v7 = vpop.xlane.xlu0 %21 }
  0x91   :  { %v25_v8 = vmul.f32 0.03125, %v22_v7  ;;  %v28_v9 = vmul.f32 %v26_v6, %v26_v6 }
  0x93   :  { %v27_v10 = vsub.f32 %v15_v1, %v25_v8  ;;  %v30_v11 = vsel %vm16_vm0, %v28_v9, 0.0 }
  0x94   :  { %31 = vadd.xlane.f32.xlu1 %v30_v11 }
  0x95   :  { %v29_v12 = vmul.f32 %v27_v10, %v27_v10 }
  0x97   :  { %v33_v13 = vsel %vm16_vm0, %v29_v12, 0.0 }
  0x98   :  { %34 = vadd.xlane.f32.xlu1 %v33_v13 }
 0x11d   :  { %v32_v14 = vpop.xlane.xlu1 %31 }
 0x11e   :  { %v36_v15 = vmul.f32 0.03125, %v32_v14 }
 0x120   :  { %v38_v16 = vadd.f32 1e-12, %v36_v15 }
 0x121   :  { %v35_v17 = vpop.xlane.xlu1 %34 }
 0x122   :  { %83 = vrsqrt.f32 %v38_v16  ;;  %v37_v18 = vmul.f32 0.03125, %v35_v17 }
 0x124   :  { %v39_v19 = vadd.f32 1e-12, %v37_v18 }
 0x126   :  { %85 = vrsqrt.f32 %v39_v19 }
 0x12f   :  { %v84_v20 = vpop.eup %83 }
 0x130   :  { %v42_v22 = vmul.f32 %v84_v20, %v26_v6 }
 0x132   :  { %v51_v24 = vmul.f32 %v77_v21, %v42_v22 }
 0x133   :  { %v86_v25 = vpop.eup %85 }
 0x134   :  { %v60_v26 = vadd.f32 %v78_v23, %v51_v24  ;;  %v43_v27 = vmul.f32 %v86_v25, %v27_v10 }
 0x136   :  { %v81_v28 = vpack.c.bf16 %v60_v26, %v60_v26  ;;  %v52_v29 = vmul.f32 %v77_v21, %v43_v27 }
 0x138   :  { %71 = vst.msk [vmem:[%s132_s3] sm:$0xf] %vm70_vm1, %v81_v28  ;;  %v61_v30 = vadd.f32 %v78_v23, %v52_v29 }
 0x13a   :  { %v82_v31 = vpack.c.bf16 %v61_v30, %v61_v30 }
 0x13c   :  { %72 = vst.msk [vmem:[%s132_s3 + $0x4] sm:$0xf] %vm70_vm1, %v82_v31 }

// kernel: multilabel_forward.11
= control target key start
LH: loop header
LB: loop body
LE: loop exit
PB: predicated region body
PF: predicated region fallthrough
CT: control target
= control target key end

     0   :  { %vm19_vm0 = vcmask 785408   ;;  %v151_v0 = vmov 0.0   ;;  %vm152_vm1 = vmmov 0   ;;  %vm47_vm2 = vcmask 261120   ;;  %s195_s1 = inlined_call_operand.vmem [shape: bf16[32,96], index: 1, kind: input, shape index: {}]   ;;  %s196_s0 = inlined_call_operand.vmem [shape: bf16[16,32], index: 0, kind: input, shape index: {}]   ;;  %s197_s2 = inlined_call_operand.vmem [shape: f32[1,96], index: 2, kind: input, shape index: {}]   ;;  %s198_s3 = inlined_call_operand.vmem [shape: bf16[16,96], index: 3, kind: output, shape index: {}]  }
   0x1   :  { %138 = vmatprep.subr.bf16.mxu0 %v151_v0  ;;  %v148_v1 = vld [vmem:[%s195_s1 + $0x8] sm:$0xff]   ;;  %142 = vmatprep.mubr.msk.bf16.mxu0 %vm152_vm1, %v151_v0  ;;  %20 = vst.msk [vmem:[#allocation2] sm:$0xff] %vm19_vm0, %v151_v0  ;;  %21 = vst.msk [vmem:[#allocation2 + $0x8] sm:$0xff] %vm19_vm0, %v151_v0  ;;  %v149_v2 = vld [vmem:[%s195_s1] sm:$0xff]   ;;  %vm119_vm3 = vcmask 781312  }
   0x2   :  { %139 = vmatpush3.bf16.msra.mxu0 %v148_v1  ;;  %v150_v3 = vld [vmem:[%s196_s0] sm:$0xff]  }
   0x3   :  { %140 = vmatprep.subr.bf16.mxu0 %v151_v0  ;;  %v130_v12 = vld [vmem:[%s197_s2] ss:$0 sm:$0xff] }
   0x6   :  { %141 = vmatpush3.bf16.msra.mxu0 %v149_v2 }
   0x8   :  { %v22_v4 = vld [vmem:[#allocation2] sm:$0xff]  ;;  %v23_v8 = vld [vmem:[#allocation2 + $0x8] sm:$0xff] }
   0x9   :  { %143 = vmatmul.mubr.msk.bf16.vlgmr.msra.gmra.mxu0 %vm47_vm2, %v150_v3 }
  0xc9   :  { %v85_v5 = vpop.f32.mrf.mxu0 }
  0xca   :  { %v92_v6 = vadd.f32 %v85_v5, %v22_v4 }
  0xcb   :  { %v144_v7 = vpop.f32.mrf.mxu0 }
  0xcc   :  { %95 = vst.msk [vmem:[#allocation2] sm:$0xff] %vm19_vm0, %v92_v6 }
  0xcd   :  { %v88_v9 = vpop.f32.mrf.mxu0 }
  0xce   :  { %v93_v10 = vadd.f32 %v88_v9, %v23_v8 }
  0xcf   :  { %v145_v11 = vpop.f32.mrf.mxu0 }
  0xd0   :  { %96 = vst.msk [vmem:[#allocation2 + $0x8] sm:$0xff] %vm19_vm0, %v93_v10 }
  0xd3   :  { %v100_v13 = vld [vmem:[#allocation2] sm:$0xff] }
  0xd4   :  { %v109_v14 = vadd.f32 %v130_v12, %v100_v13 }
  0xd6   :  { %v133_v15 = vpack.c.bf16 %v109_v14, %v109_v14 }
  0xd7   :  { %v101_v16 = vld [vmem:[#allocation2 + $0x8] sm:$0xff] }
  0xd8   :  { %120 = vst.msk [vmem:[%s198_s3] sm:$0xf] %vm119_vm3, %v133_v15  ;;  %v110_v17 = vadd.f32 %v130_v12, %v101_v16 }
  0xda   :  { %v134_v18 = vpack.c.bf16 %v110_v17, %v110_v17 }
  0xdc   :  { %121 = vst.msk [vmem:[%s198_s3 + $0x4] sm:$0xf] %vm119_vm3, %v134_v18 }

// kernel: multilabel_forward.12
= control target key start
LH: loop header
LB: loop body
LE: loop exit
PB: predicated region body
PF: predicated region fallthrough
CT: control target
= control target key end

     0   :  { %s569_s9 = smov 0   ;;  %s624_s0 = inlined_call_operand.vmem [shape: bf16[16,96], index: 0, kind: input, shape index: {}]   ;;  %s625_s1 = inlined_call_operand.vmem [shape: f32[2,1,8], index: 1, kind: input, shape index: {}]   ;;  %s626_s2 = inlined_call_operand.vmem [shape: bf16[16,32], index: 2, kind: output, shape index: {}]  }
   0x1 LB: > { %s464_s10 = sadd.s32 4294967295, %s544_s9   ;;  %p468_p0 = scmp.ge.s32.totalorder %s544_s9, 1  ;;  %s544_s9 = sphi %s569_s9, %s12_s9  }
   0x2   : > { %p119_p1 = scmp.lt.s32.totalorder %s544_s9, 3 }
   0x4   : > { %p120_p2 = pnand %p468_p0, %p119_p1 }
   0x5   : > { %p142_p3 = scmp.lt.s32.totalorder (!%p120_p2), %s464_s10, 1  ;;  %s548_s15 = smov (!%p120_p2), 96  }
   0x6   : > { %123 = sbr.rel (%p120_p2) target bundleno = 1481 (0x5c9), region = 28  ;;  %s549_s16 = smov (!%p120_p2), 64  }
   0x7   : > { %s550_s20 = smov (!%p120_p2), 80   ;;  %s551_s21 = smov (!%p120_p2), 112  }
   0x8   : > { %s552_s25 = smov (!%p120_p2), 48   ;;  %s553_s26 = smov (!%p120_p2), 16  }
   0xb   : > { %v546_v0 = vmov 0.0   ;;  %vm547_vm0 = vmmov 0   ;;  %s628_s10 = smov (!%p142_p3, %s464_s10), 1  ;;  %vm161_vm1 = vcmask 130048   ;;  %vm216_vm2 = vcmask 64512  }
   0xc   : > { %489 = vmatprep.subr.bf16.mxu0 %v546_v0  ;;  %491 = vmatprep.mubr.msk.bf16.mxu0 %vm547_vm0, %v546_v0  ;;  %s469_s11 = sshll.u32 %s628_s10, 2  ;;  %s148_s19 = scalar_lea.vmem %s625_s1, %s628_s10  ;;  %vm234_vm3 = vcmask 1043456   ;;  %vm279_vm4 = vcmask 125952   ;;  %vm400_vm5 = vcmask 257152  }
   0xd   : > { %495 = vmatprep.subr.bf16.mxu1 %v546_v0  ;;  %497 = vmatprep.mubr.msk.bf16.mxu1 %vm547_vm0, %v546_v0  ;;  %s145_s14 = scalar_lea.vmem %s624_s0, %s469_s11  ;;  %v473_v6 = vld [vmem:[%s148_s19] ss:$0 sm:$0xff]  ;;  %s612_s24 = scalar_lea.vmem %s626_s2, %s469_s11 }
   0xe   : > { %v155_v1 = vld [vmem:[%s145_s14] sm:$0xf] }
   0xf   : > { %v587_v2 = vcombine.low %v155_v1, %v155_v1 }
  0x11   : > { %159 = vrot.lane.b32.xlu0 %v587_v2, %s548_s15  ;;  %229 = vrot.lane.b32.xlu1 %v587_v2, %s549_s16 }
  0x83   : > { %v160_v3 = vpop.permute.xlu0 %159  ;;  %v230_v13 = vpop.permute.xlu1 %229 }
  0x84   : > { %v166_v4 = vsel %vm161_vm1, %v160_v3, 0  ;;  %v236_v14 = vsel %vm234_vm3, %v230_v13, 0 }
  0x85   : > { %490 = vmatpush3.bf16.xpose.msra.mxu0 %v166_v4  ;;  %496 = vmatpush3.bf16.msra.mxu1 %v236_v14 }
  0x86   : > { %507 = vmatprep.subr.bf16.mxu0 %v546_v0  ;;  %501 = vmatprep.subr.bf16.mxu1 %v546_v0 }
  0x8c   : > { %492 = vmatmul.mubr.msk.bf16.vlgmr.msra.gmra.mxu0 %vm161_vm1, %v155_v1 }
  0x8d   : > { %509 = vmatprep.mubr.msk.bf16.mxu0 %vm547_vm0, %v546_v0 }
 0x14c   : > { %v202_v5 = vpop.f32.mrf.mxu0 }
 0x14d   : > { %v208_v7 = vmul.f32 0.25, %v202_v5 }
 0x14e   : > { %v493_v8 = vpop.f32.mrf.mxu0 }
 0x14f   : > { %v215_v9 = vadd.f32 %v473_v6, %v208_v7 }
 0x150   : > { %v205_v10 = vpop.f32.mrf.mxu0 }
 0x151   : > { %v217_v11 = vsel %vm216_vm2, %v215_v9, -inf }
 0x152   : > { %218 = vmax.xlane.f32.xlu0 %v217_v11  ;;  %v494_v12 = vpop.f32.mrf.mxu0 }
 0x1db   : > { %v219_v15 = vpop.xlane.xlu0 %218 }
 0x1dc   : > { %v220_v16 = vsub.f32 %v215_v9, %v219_v15 }
 0x1de   : > { %v221_v17 = vmul.f32 1.442695, %v220_v16 }
 0x1e0   : > { %530 = vpow2.f32 %v221_v17 }
 0x1ed   : > { %v531_v18 = vpop.eup %530 }
 0x1ee   : > { %v223_v19 = vsel %vm216_vm2, %v531_v18, 0.0 }
 0x1ef   : > { %224 = vadd.xlane.f32.xlu1 %v223_v19 }
 0x200   : > { %283 = vrot.lane.b32.xlu1 %v587_v2, %s550_s20 }
 0x204   : > { %281 = vrot.lane.b32.xlu1 %v587_v2, %s551_s21 }
 0x278   : > { %v225_v20 = vpop.xlane.xlu1 %224 }
 0x279   : > { %532 = vrcp.f32 %v225_v20 }
 0x27c   : > { %v284_v22 = vpop.permute.xlu1 %283 }
 0x27d   : > { %v289_v24 = vsel %vm161_vm1, %v284_v22, 0 }
 0x280   : > { %v282_v26 = vpop.permute.xlu1 %281 }
 0x286   : > { %v533_v21 = vpop.eup %532 }
 0x287   : > { %v227_v23 = vmul.f32 %v533_v21, %v531_v18 }
 0x289   : > { %v228_v25 = vpack.c.bf16 %v227_v23, %v227_v23 }
 0x28b   : > { %498 = vmatmul.mubr.msk.bf16.vlgmr.msra.gmra.mxu1 %vm216_vm2, %v228_v25 }
 0x28c   : > { %502 = vmatpush3.bf16.xpose.msra.mxu1 %v289_v24  ;;  %503 = vmatprep.mubr.msk.bf16.mxu1 %vm547_vm0, %v546_v0 }
 0x293   : > { %504 = vmatmul.mubr.msk.bf16.vlgmr.msra.gmra.mxu1 %vm161_vm1, %v282_v26 }
 0x34b   : > { %v272_v27 = vpop.f32.mrf.mxu1 }
 0x34c   : > { %v278_v28 = vpack.c.bf16 %v272_v27, %v272_v27 }
 0x34d   : > { %v499_v29 = vpop.f32.mrf.mxu1 }
 0x34e   : > { %280 = vst.msk [vmem:[%s612_s24] sm:$0xf] %vm279_vm4, %v278_v28 }
 0x34f   : > { %v275_v30 = vpop.f32.mrf.mxu1 }
 0x351   : > { %v500_v31 = vpop.f32.mrf.mxu1 }
 0x353   : > { %v325_v32 = vpop.f32.mrf.mxu1 }
 0x354   : > { %v331_v33 = vmul.f32 0.25, %v325_v32 }
 0x355   : > { %v505_v34 = vpop.f32.mrf.mxu1 }
 0x356   : > { %v332_v35 = vadd.f32 %v473_v6, %v331_v33 }
 0x357   : > { %v328_v36 = vpop.f32.mrf.mxu1 }
 0x358   : > { %v333_v37 = vsel %vm216_vm2, %v332_v35, -inf }
 0x359   : > { %334 = vmax.xlane.f32.xlu1 %v333_v37  ;;  %v506_v38 = vpop.f32.mrf.mxu1 }
 0x3e2   : > { %v335_v39 = vpop.xlane.xlu1 %334 }
 0x3e3   : > { %v336_v40 = vsub.f32 %v332_v35, %v335_v39 }
 0x3e5   : > { %v337_v41 = vmul.f32 1.442695, %v336_v40 }
 0x3e7   : > { %534 = vpow2.f32 %v337_v41 }
 0x3f4   : > { %v535_v42 = vpop.eup %534 }
 0x3f5   : > { %v339_v43 = vsel %vm216_vm2, %v535_v42, 0.0 }
 0x3f6   : > { %340 = vadd.xlane.f32.xlu0 %v339_v43 }
 0x40c   : > { %345 = vrot.lane.b32.xlu0 %v587_v2, %s552_s25 }
 0x47f   : > { %v341_v44 = vpop.xlane.xlu0 %340 }
 0x480   : > { %536 = vrcp.f32 %v341_v44 }
 0x483   : > { %v346_v45 = vpop.permute.xlu0 %345 }
 0x484   : > { %v351_v46 = vsel %vm234_vm3, %v346_v45, 0 }
 0x485   : > { %508 = vmatpush3.bf16.msra.mxu0 %v351_v46 }
 0x48d   : > { %v537_v47 = vpop.eup %536 }
 0x48e   : > { %v343_v48 = vmul.f32 %v537_v47, %v535_v42 }
 0x490   : > { %v344_v49 = vpack.c.bf16 %v343_v48, %v343_v48 }
 0x492   : > { %510 = vmatmul.mubr.msk.bf16.vlgmr.msra.gmra.mxu0 %vm216_vm2, %v344_v49 }
 0x552   : > { %v387_v50 = vpop.f32.mrf.mxu0 }
 0x553   : > { %v480_v51 = vpack.c.bf16 %v387_v50, %v387_v50 }
 0x554   : > { %v511_v52 = vpop.f32.mrf.mxu0 }
 0x555   : > { %397 = vrot.lane.b32.xlu0 %v480_v51, %s553_s26 }
 0x556   : > { %v390_v53 = vpop.f32.mrf.mxu0 }
 0x558   : > { %v512_v54 = vpop.f32.mrf.mxu0 }
 0x5c7   : > { %v398_v55 = vpop.permute.xlu0 %397 }
 0x5c8   : > { %401 = vst.msk [vmem:[%s612_s24] sm:$0xf] %vm400_vm5, %v398_v55 }
 0x5c9 PF: > { %s12_s9 = sadd.s32 1, %s544_s9  }
 0x5ca   : > { %p9_p4 = scmp.ge.s32.totalorder %s12_s9, 4  }
 0x5cc   :  { %11 = sbr.rel (!%p9_p4) target bundleno = 1 (0x1), region = 61 }

// kernel: multilabel_forward.13
= control target key start
LH: loop header
LB: loop body
LE: loop exit
PB: predicated region body
PF: predicated region fallthrough
CT: control target
= control target key end

     0   :  { %v200_v0 = vmov 0.0   ;;  %vm201_vm0 = vmmov 0   ;;  %vm54_vm1 = vcmask 261120   ;;  %vm158_vm2 = vcmask 257024   ;;  %s269_s1 = inlined_call_operand.vmem [shape: bf16[32,32], index: 1, kind: input, shape index: {}]   ;;  %s270_s0 = inlined_call_operand.vmem [shape: bf16[16,32], index: 0, kind: input, shape index: {}]   ;;  %s271_s3 = inlined_call_operand.vmem [shape: bf16[16,32], index: 3, kind: input, shape index: {}]   ;;  %s272_s2 = inlined_call_operand.vmem [shape: f32[1,32], index: 2, kind: input, shape index: {}]   ;;  %s273_s4 = inlined_call_operand.vmem [shape: f32[1,32], index: 4, kind: input, shape index: {}]   ;;  %s274_s5 = inlined_call_operand.vmem [shape: f32[1,32], index: 5, kind: input, shape index: {}]   ;;  %s275_s6 = inlined_call_operand.vmem [shape: bf16[16,32], index: 6, kind: output, shape index: {}]  }
   0x1   :  { %183 = vmatprep.subr.bf16.mxu0 %v200_v0  ;;  %v193_v1 = vld [vmem:[%s269_s1 + $0x8] sm:$0xff]   ;;  %187 = vmatprep.mubr.msk.bf16.mxu0 %vm201_vm0, %v200_v0  ;;  %v194_v2 = vld [vmem:[%s269_s1] sm:$0xff]  }
   0x2   :  { %184 = vmatpush3.bf16.msra.mxu0 %v193_v1  ;;  %v195_v3 = vld [vmem:[%s270_s0] sm:$0xff]  }
   0x3   :  { %185 = vmatprep.subr.bf16.mxu0 %v200_v0  ;;  %v177_v4 = vld [vmem:[%s271_s3] sm:$0xff]  }
   0x4   :  { %v165_v5 = vld [vmem:[%s272_s2] ss:$0 sm:$0xff]  ;;  %v178_v6 = vunpack.c.l.bf16 %v177_v4  ;;  %v179_v11 = vunpack.c.h.bf16 %v177_v4 }
   0x5   :  { %v170_v35 = vld [vmem:[%s273_s4] ss:$0 sm:$0xff] }
   0x6   :  { %186 = vmatpush3.bf16.msra.mxu0 %v194_v2  ;;  %v171_v37 = vld [vmem:[%s274_s5] ss:$0 sm:$0xff] }
   0x9   :  { %188 = vmatmul.mubr.msk.bf16.vlgmr.msra.gmra.mxu0 %vm54_vm1, %v195_v3 }
  0xc9   :  { %v92_v7 = vpop.f32.mrf.mxu0 }
  0xca   :  { %v93_v8 = vadd.f32 %v165_v5, %v92_v7 }
  0xcb   :  { %v189_v9 = vpop.f32.mrf.mxu0 }
  0xcc   :  { %v103_v10 = vadd.f32 %v178_v6, %v93_v8 }
  0xcd   :  { %v95_v12 = vpop.f32.mrf.mxu0 }
  0xce   :  { %v96_v13 = vadd.f32 %v165_v5, %v95_v12  ;;  %v105_v14 = vsel %vm54_vm1, %v103_v10, 0.0 }
  0xcf   :  { %106 = vadd.xlane.f32.xlu0 %v105_v14  ;;  %v190_v15 = vpop.f32.mrf.mxu0 }
  0xd0   :  { %v104_v16 = vadd.f32 %v179_v11, %v96_v13 }
  0xd2   :  { %v108_v17 = vsel %vm54_vm1, %v104_v16, 0.0 }
  0xd3   :  { %109 = vadd.xlane.f32.xlu0 %v108_v17 }
 0x158   :  { %v107_v18 = vpop.xlane.xlu0 %106 }
 0x159   :  { %v112_v19 = vmul.f32 0.03125, %v107_v18 }
 0x15b   :  { %v114_v20 = vsub.f32 %v103_v10, %v112_v19 }
 0x15c   :  { %v110_v21 = vpop.xlane.xlu0 %109 }
 0x15d   :  { %v113_v22 = vmul.f32 0.03125, %v110_v21  ;;  %v116_v23 = vmul.f32 %v114_v20, %v114_v20 }
 0x15f   :  { %v115_v24 = vsub.f32 %v104_v16, %v113_v22  ;;  %v118_v25 = vsel %vm54_vm1, %v116_v23, 0.0 }
 0x160   :  { %119 = vadd.xlane.f32.xlu1 %v118_v25 }
 0x161   :  { %v117_v26 = vmul.f32 %v115_v24, %v115_v24 }
 0x163   :  { %v121_v27 = vsel %vm54_vm1, %v117_v26, 0.0 }
 0x164   :  { %122 = vadd.xlane.f32.xlu1 %v121_v27 }
 0x1e9   :  { %v120_v28 = vpop.xlane.xlu1 %119 }
 0x1ea   :  { %v124_v29 = vmul.f32 0.03125, %v120_v28 }
 0x1ec   :  { %v126_v30 = vadd.f32 1e-12, %v124_v29 }
 0x1ed   :  { %v123_v31 = vpop.xlane.xlu1 %122 }
 0x1ee   :  { %196 = vrsqrt.f32 %v126_v30  ;;  %v125_v32 = vmul.f32 0.03125, %v123_v31 }
 0x1f0   :  { %v127_v33 = vadd.f32 1e-12, %v125_v32 }
 0x1f2   :  { %198 = vrsqrt.f32 %v127_v33 }
 0x1fb   :  { %v197_v34 = vpop.eup %196 }
 0x1fc   :  { %v130_v36 = vmul.f32 %v197_v34, %v114_v20 }
 0x1fe   :  { %v139_v38 = vmul.f32 %v170_v35, %v130_v36 }
 0x1ff   :  { %v199_v39 = vpop.eup %198 }
 0x200   :  { %v148_v40 = vadd.f32 %v171_v37, %v139_v38  ;;  %v131_v41 = vmul.f32 %v199_v39, %v115_v24 }
 0x202   :  { %v174_v42 = vpack.c.bf16 %v148_v40, %v148_v40  ;;  %v140_v43 = vmul.f32 %v170_v35, %v131_v41 }
 0x204   :  { %159 = vst.msk [vmem:[%s275_s6] sm:$0xf] %vm158_vm2, %v174_v42  ;;  %v149_v44 = vadd.f32 %v171_v37, %v140_v43 }
 0x206   :  { %v175_v45 = vpack.c.bf16 %v149_v44, %v149_v44 }
 0x208   :  { %160 = vst.msk [vmem:[%s275_s6 + $0x4] sm:$0xf] %vm158_vm2, %v175_v45 }

// kernel: multilabel_forward.19
= control target key start
LH: loop header
LB: loop body
LE: loop exit
PB: predicated region body
PF: predicated region fallthrough
CT: control target
= control target key end

     0   :  { %v200_v0 = vmov 0.0   ;;  %vm201_vm0 = vmmov 0   ;;  %vm45_vm1 = vcmask 261120   ;;  %s258_s1 = inlined_call_operand.vmem [shape: bf16[32,32], index: 1, kind: input, shape index: {}]   ;;  %s259_s0 = inlined_call_operand.vmem [shape: bf16[2,32], index: 0, kind: input, shape index: {}]   ;;  %s260_s3 = inlined_call_operand.vmem [shape: bf16[32,128], index: 3, kind: input, shape index: {}]   ;;  %s261_s2 = inlined_call_operand.vmem [shape: f32[1,32], index: 2, kind: input, shape index: {}]   ;;  %s262_s4 = inlined_call_operand.vmem [shape: f32[1,128], index: 4, kind: input, shape index: {}]   ;;  %s263_s5 = inlined_call_operand.vmem [shape: f32[2,128], index: 5, kind: output, shape index: {}]  }
   0x1   :  { %176 = vmatprep.subr.bf16.mxu0 %v200_v0  ;;  %v194_v1 = vld [vmem:[%s258_s1 + $0x8] sm:$0xff]   ;;  %180 = vmatprep.mubr.msk.bf16.mxu0 %vm201_vm0, %v200_v0  ;;  %v195_v2 = vld [vmem:[%s258_s1] sm:$0xff]  }
   0x2   :  { %184 = vmatprep.subr.bf16.mxu1 %v200_v0  ;;  %188 = vmatprep.mubr.msk.bf16.mxu1 %vm201_vm0, %v200_v0  ;;  %v21_v3 = vld [vmem:[%s259_s0] sm:$0x1]  ;;  %v196_v4 = vld [vmem:[%s260_s3 + $0x8] sm:$0xff]  }
   0x3   :  { %177 = vmatpush3.bf16.msra.mxu0 %v194_v1  ;;  %185 = vmatpush3.bf16.msra.mxu1 %v196_v4  ;;  %v197_v5 = vld [vmem:[%s260_s3] sm:$0xff]  }
   0x4   :  { %178 = vmatprep.subr.bf16.mxu0 %v200_v0  ;;  %186 = vmatprep.subr.bf16.mxu1 %v200_v0  ;;  %v162_v6 = vld [vmem:[%s261_s2] ss:$0 sm:$0xff] }
   0x5   :  { %v166_v14 = vld [vmem:[%s262_s4] ss:$0 sm:$0xff] }
   0x7   :  { %179 = vmatpush3.bf16.msra.mxu0 %v195_v2  ;;  %187 = vmatpush3.bf16.msra.mxu1 %v197_v5 }
   0xa   :  { %181 = vmatmul.mubr.msk.bf16.vlgmr.msra.gmra.mxu0 %vm45_vm1, %v21_v3 }
  0xca   :  { %v83_v7 = vpop.f32.mrf.mxu0 }
  0xcb   :  { %v84_v8 = vadd.f32 %v162_v6, %v83_v7 }
  0xcc   :  { %v182_v9 = vpop.f32.mrf.mxu0 }
  0xcd   :  { %198 = vtanh.f32 %v84_v8 }
  0xce   :  { %v86_v10 = vpop.f32.mrf.mxu0 }
  0xd0   :  { %v183_v11 = vpop.f32.mrf.mxu0 }
  0xda   :  { %v199_v12 = vpop.eup %198 }
  0xdb   :  { %v90_v13 = vpack.c.bf16 %v199_v12, %v199_v12 }
  0xdd   :  { %189 = vmatmul.mubr.msk.bf16.vlgmr.msra.gmra.mxu1 %vm45_vm1, %v90_v13 }
 0x19d   :  { %v151_v15 = vpop.f32.mrf.mxu1 }
 0x19e   :  { %v152_v16 = vadd.f32 %v166_v14, %v151_v15 }
 0x19f   :  { %v190_v17 = vpop.f32.mrf.mxu1 }
 0x1a0   :  { %157 = vst [vmem:[%s263_s5] sm:$0x3] %v152_v16 }
 0x1a1   :  { %v154_v18 = vpop.f32.mrf.mxu1 }
 0x1a3   :  { %v191_v19 = vpop.f32.mrf.mxu1 }

// kernel: multilabel_forward.14
= control target key start
LH: loop header
LB: loop body
LE: loop exit
PB: predicated region body
PF: predicated region fallthrough
CT: control target
= control target key end

     0   :  { %v324_v0 = vmov 0.0   ;;  %vm325_vm0 = vmmov 0   ;;  %vm57_vm1 = vcmask 261120   ;;  %vm152_vm2 = vcmask 523264   ;;  %s410_s1 = inlined_call_operand.vmem [shape: bf16[32,64], index: 1, kind: input, shape index: {}]   ;;  %s411_s0 = inlined_call_operand.vmem [shape: bf16[16,32], index: 0, kind: input, shape index: {}]   ;;  %s412_s3 = inlined_call_operand.vmem [shape: bf16[64,32], index: 3, kind: input, shape index: {}]   ;;  %s413_s2 = inlined_call_operand.vmem [shape: f32[1,64], index: 2, kind: input, shape index: {}]   ;;  %s414_s4 = inlined_call_operand.vmem [shape: f32[1,32], index: 4, kind: input, shape index: {}]   ;;  %s415_s5 = inlined_call_operand.vmem [shape: f32[1,32], index: 5, kind: input, shape index: {}]   ;;  %s416_s6 = inlined_call_operand.vmem [shape: f32[1,32], index: 6, kind: input, shape index: {}]   ;;  %s417_s7 = inlined_call_operand.vmem [shape: bf16[16,32], index: 7, kind: output, shape index: {}]  }
   0x1   :  { %286 = vmatprep.subr.bf16.mxu0 %v324_v0  ;;  %v308_v1 = vld [vmem:[%s410_s1 + $0x8] sm:$0xff]   ;;  %290 = vmatprep.mubr.msk.bf16.mxu0 %vm325_vm0, %v324_v0  ;;  %v309_v2 = vld [vmem:[%s410_s1] sm:$0xff]   ;;  %v311_v4 = vld [vmem:[%s412_s3 + $0x18] sm:$0xff]   ;;  %vm254_vm3 = vcmask 257024  }
   0x2   :  { %294 = vmatprep.subr.bf16.mxu1 %v324_v0  ;;  %302 = vmatprep.mubr.msk.bf16.mxu1 %vm325_vm0, %v324_v0  ;;  %v27_v3 = vld [vmem:[%s411_s0] sm:$0xff]   ;;  %v312_v5 = vld [vmem:[%s412_s3 + $0x10] sm:$0xff]   ;;  %v313_v6 = vld [vmem:[%s412_s3 + $0x8] sm:$0xff]  }
   0x3   :  { %287 = vmatpush3.bf16.msra.mxu0 %v308_v1  ;;  %295 = vmatpush3.bf16.msra.mxu1 %v311_v4  ;;  %v314_v7 = vld [vmem:[%s412_s3] sm:$0xff]   ;;  %v197_v27 = vunpack.c.l.bf16 %v27_v3  ;;  %v198_v32 = vunpack.c.h.bf16 %v27_v3 }
   0x4   :  { %288 = vmatprep.subr.bf16.mxu0 %v324_v0  ;;  %296 = vmatprep.subr.bf16.mxu1 %v324_v0  ;;  %v261_v8 = vld [vmem:[%s413_s2] ss:$0 sm:$0xff] }
   0x5   :  { %v266_v26 = vld [vmem:[%s414_s4] ss:$0 sm:$0xff] }
   0x6   :  { %v272_v56 = vld [vmem:[%s415_s5] ss:$0 sm:$0xff] }
   0x7   :  { %289 = vmatpush3.bf16.msra.mxu0 %v309_v2  ;;  %297 = vmatpush3.bf16.msra.mxu1 %v312_v5  ;;  %v273_v58 = vld [vmem:[%s416_s6] ss:$0 sm:$0xff] }
   0x8   :  { %298 = vmatprep.subr.bf16.mxu1 %v324_v0 }
   0xa   :  { %291 = vmatmul.mubr.msk.bf16.vlgmr.msra.gmra.mxu0 %vm57_vm1, %v27_v3 }
   0xb   :  { %299 = vmatpush3.bf16.msra.mxu1 %v313_v6 }
   0xc   :  { %300 = vmatprep.subr.bf16.mxu1 %v324_v0 }
   0xf   :  { %301 = vmatpush3.bf16.msra.mxu1 %v314_v7 }
  0xca   :  { %v95_v9 = vpop.f32.mrf.mxu0 }
  0xcb   :  { %v96_v10 = vadd.f32 %v261_v8, %v95_v9 }
  0xcc   :  { %v292_v11 = vpop.f32.mrf.mxu0 }
  0xcd   :  { %v104_v12 = vmul.f32 0.70710677, %v96_v10  ;;  %v102_v20 = vmul.f32 0.5, %v96_v10 }
  0xce   :  { %v98_v13 = vpop.f32.mrf.mxu0 }
  0xcf   :  { %316 = verf.f32 %v104_v12  ;;  %v99_v14 = vadd.f32 %v261_v8, %v98_v13 }
  0xd0   :  { %v293_v15 = vpop.f32.mrf.mxu0 }
  0xd1   :  { %v105_v16 = vmul.f32 0.70710677, %v99_v14  ;;  %v103_v21 = vmul.f32 0.5, %v99_v14 }
  0xd3   :  { %318 = verf.f32 %v105_v16 }
  0xdc   :  { %v317_v17 = vpop.eup %316 }
  0xdd   :  { %v108_v18 = vadd.f32 1.0, %v317_v17 }
  0xdf   :  { %v110_v23 = vmul.f32 %v108_v18, %v102_v20 }
  0xe0   :  { %v319_v19 = vpop.eup %318 }
  0xe1   :  { %v109_v22 = vadd.f32 1.0, %v319_v19 }
  0xe3   :  { %v111_v24 = vmul.f32 %v109_v22, %v103_v21 }
  0xe5   :  { %v112_v25 = vpack.c.bf16 %v111_v24, %v110_v23 }
  0xe7   :  { %303 = vmatmul.mubr.msk.bf16.vlgmr.msra.gmra.mxu1 %vm152_vm2, %v112_v25 }
 0x1a7   :  { %v190_v28 = vpop.f32.mrf.mxu1 }
 0x1a8   :  { %v191_v29 = vadd.f32 %v266_v26, %v190_v28 }
 0x1a9   :  { %v304_v30 = vpop.f32.mrf.mxu1 }
 0x1aa   :  { %v199_v31 = vadd.f32 %v197_v27, %v191_v29 }
 0x1ab   :  { %v193_v33 = vpop.f32.mrf.mxu1 }
 0x1ac   :  { %v194_v34 = vadd.f32 %v266_v26, %v193_v33  ;;  %v201_v35 = vsel %vm57_vm1, %v199_v31, 0.0 }
 0x1ad   :  { %202 = vadd.xlane.f32.xlu0 %v201_v35  ;;  %v305_v36 = vpop.f32.mrf.mxu1 }
 0x1ae   :  { %v200_v37 = vadd.f32 %v198_v32, %v194_v34 }
 0x1b0   :  { %v204_v38 = vsel %vm57_vm1, %v200_v37, 0.0 }
 0x1b1   :  { %205 = vadd.xlane.f32.xlu0 %v204_v38 }
 0x236   :  { %v203_v39 = vpop.xlane.xlu0 %202 }
 0x237   :  { %v208_v40 = vmul.f32 0.03125, %v203_v39 }
 0x239   :  { %v210_v41 = vsub.f32 %v199_v31, %v208_v40 }
 0x23a   :  { %v206_v42 = vpop.xlane.xlu0 %205 }
 0x23b   :  { %v209_v43 = vmul.f32 0.03125, %v206_v42  ;;  %v212_v44 = vmul.f32 %v210_v41, %v210_v41 }
 0x23d   :  { %v211_v45 = vsub.f32 %v200_v37, %v209_v43  ;;  %v214_v46 = vsel %vm57_vm1, %v212_v44, 0.0 }
 0x23e   :  { %215 = vadd.xlane.f32.xlu1 %v214_v46 }
 0x23f   :  { %v213_v47 = vmul.f32 %v211_v45, %v211_v45 }
 0x241   :  { %v217_v48 = vsel %vm57_vm1, %v213_v47, 0.0 }
 0x242   :  { %218 = vadd.xlane.f32.xlu1 %v217_v48 }
 0x2c7   :  { %v216_v49 = vpop.xlane.xlu1 %215 }
 0x2c8   :  { %v220_v50 = vmul.f32 0.03125, %v216_v49 }
 0x2ca   :  { %v222_v51 = vadd.f32 1e-12, %v220_v50 }
 0x2cb   :  { %v219_v52 = vpop.xlane.xlu1 %218 }
 0x2cc   :  { %320 = vrsqrt.f32 %v222_v51  ;;  %v221_v53 = vmul.f32 0.03125, %v219_v52 }
 0x2ce   :  { %v223_v54 = vadd.f32 1e-12, %v221_v53 }
 0x2d0   :  { %322 = vrsqrt.f32 %v223_v54 }
 0x2d9   :  { %v321_v55 = vpop.eup %320 }
 0x2da   :  { %v226_v57 = vmul.f32 %v321_v55, %v210_v41 }
 0x2dc   :  { %v235_v59 = vmul.f32 %v272_v56, %v226_v57 }
 0x2dd   :  { %v323_v60 = vpop.eup %322 }
 0x2de   :  { %v244_v61 = vadd.f32 %v273_v58, %v235_v59  ;;  %v227_v62 = vmul.f32 %v323_v60, %v211_v45 }
 0x2e0   :  { %v276_v63 = vpack.c.bf16 %v244_v61, %v244_v61  ;;  %v236_v0 = vmul.f32 %v272_v56, %v227_v62 }
 0x2e2   :  { %255 = vst.msk [vmem:[%s417_s7] sm:$0xf] %vm254_vm3, %v276_v63  ;;  %v245_v1 = vadd.f32 %v273_v58, %v236_v0 }
 0x2e4   :  { %v277_v2 = vpack.c.bf16 %v245_v1, %v245_v1 }
 0x2e6   :  { %256 = vst.msk [vmem:[%s417_s7 + $0x4] sm:$0xf] %vm254_vm3, %v277_v2 }

</bundles_post_ra>
